<compile_context>
chip_gen: v6e
topology: v6e:2x2x1
jax: 0.10.0
libtpu: 0.0.40
codegen_flags: <defaults>
</compile_context>

<pallas_src>
import functools

import jax
import jax.numpy as jnp
import numpy as np
from jax import lax
from jax.experimental import pallas as pl
from jax.experimental.pallas import tpu as pltpu


def _round_up(x, m):
    return (x + m - 1) // m * m


# ----------------------------------------------------------------------------
# Pallas kernel: one (sample, Cout-tile) per grid step, padded-coordinate space.
# ----------------------------------------------------------------------------
def _cna3d_kernel(x_ref, w_ref, b_ref, mask_ref, o_ref, *,
                  Wp, HpWp, Cin_p, tCout, Lout_p, inv_n,
                  use_norm, eps, negative_slope):
    # x_ref   : (1, Cin_p, L_in)     flattened zero-padded volume (mxu dtype)
    # w_ref   : (3, tCout, 9*Cin_p)  per-kd, tap-major / channel-minor weights
    # b_ref   : (tCout, 1)           f32 bias
    # mask_ref: (1, Lout_p)          f32 validity mask (1.0 at real voxels)
    # o_ref   : (1, tCout, Lout_p)   lane-dense output (padded coordinates)

    # 3 matmuls (K = 9*Cin_p) instead of one 27x-patches buffer: each tap is a
    # static lane-offset slice of the flattened padded volume (lane-dense).
    acc = None
    for kd in range(3):
        slabs = []
        for kh in range(3):
            for kw in range(3):
                off = kd * HpWp + kh * Wp + kw
                slabs.append(x_ref[0, :, pl.ds(off, Lout_p)])     # (Cin_p, Lout_p)
        patches = jnp.concatenate(slabs, axis=0)                  # (9*Cin_p, Lout_p)
        part = jnp.dot(w_ref[kd], patches,
                       preferred_element_type=jnp.float32)        # (tCout, Lout_p)
        acc = part if acc is None else acc + part

    acc = acc + b_ref[...]                                        # f32 bias add

    if use_norm:
        # InstanceNorm3d (affine=False, biased variance) over VALID voxels only.
        # Two-pass (centered) variance kept on purpose: E[x^2]-mean^2 can cancel.
        m = mask_ref[...]
        mean = jnp.sum(acc * m, axis=-1, keepdims=True) * jnp.float32(inv_n)
        cen = acc - mean
        var = jnp.sum(cen * cen * m, axis=-1, keepdims=True) * jnp.float32(inv_n)
        acc = cen * lax.rsqrt(var + jnp.float32(eps))

    if negative_slope is not None:
        acc = jnp.where(acc >= 0, acc, acc * jnp.float32(negative_slope))

    o_ref[...] = acc.reshape(1, tCout, Lout_p).astype(o_ref.dtype)


# ----------------------------------------------------------------------------
# Public wrapper: PyTorch-style NCDHW in / NCDHW out.
# ----------------------------------------------------------------------------
def cna3d(x, weight, bias, *, norm_args=None, activation_args=None,
          mxu_dtype=jnp.float32, block_cout=None):
    """CNA3d forward.

    x      : (N, Cin, D, H, W)      NCDHW (PyTorch layout)
    weight : (Cout, Cin, 3, 3, 3)   PyTorch Conv3d weight layout
    bias   : (Cout,)
    mxu_dtype : MXU operand dtype (bf16 fast path on v5e/v6e/v7x; epilogue
                is always f32).
    """
    N, Cin, D, H, W = x.shape
    Cout = weight.shape[0]
    assert weight.shape == (Cout, Cin, 3, 3, 3)
    # TODO(synk): only kernel_size=3, stride=1, padding=(1,1,1) (the module's
    # default configuration) is implemented; other kSize/stride need a
    # different tap/halo structure.
    # TODO(synk): whole-sample-per-grid-step blocks; volumes too large for VMEM
    # need an extra spatial (D) grid axis with a 1-voxel halo and two-pass
    # InstanceNorm statistics accumulated across spatial tiles.
    # TODO(synk): InstanceNorm3d affine / track_running_stats variants are not
    # implemented (PyTorch defaults are affine=False, track_running_stats=False).

    use_norm = norm_args is not None
    eps = float(norm_args.get("eps", 1e-5)) if use_norm else 1e-5
    negative_slope = (float(activation_args.get("negative_slope", 0.01))
                      if activation_args is not None else None)

    mxu_dtype = jnp.dtype(mxu_dtype)
    out_dtype = x.dtype

    # Channel padding to the sublane packing of the MXU operand dtype
    # (f32 -> 8, bf16 -> 16) so per-kd slab concatenation stays tile-aligned.
    sub = 8 * (4 // mxu_dtype.itemsize)
    Cin_p = _round_up(Cin, sub)
    Cout_p = _round_up(Cout, 8)          # f32 epilogue / output sublane multiple

    Dp, Hp, Wp = D + 2, H + 2, W + 2
    HpWp = Hp * Wp
    Lpad = Dp * HpWp                     # flattened padded volume length
    Lout_p = _round_up(D * HpWp, 128)    # lane-dense output length (padded coords)
    max_off = 2 * HpWp + 2 * Wp + 2      # largest tap offset
    L_in = _round_up(max(Lpad, Lout_p + max_off), 128)

    # One-shot lane-dense input prep in HBM: zero halo + channel pad + flatten
    # + cast to the MXU operand dtype.  No in-kernel halo scratch / zero-fill.
    x_p = jnp.pad(x, ((0, 0), (0, Cin_p - Cin), (1, 1), (1, 1), (1, 1)))
    x_flat = x_p.reshape(N, Cin_p, Lpad)
    x_flat = jnp.pad(x_flat, ((0, 0), (0, 0), (0, L_in - Lpad))).astype(mxu_dtype)

    # (Cout, Cin, kd, kh, kw) -> (kd, Cout_p, (kh, kw, cin)) matching the
    # kernel's per-kd, tap-major / channel-minor patch-row ordering.
    w_t = jnp.transpose(weight, (2, 0, 3, 4, 1))          # (3, Cout, 3, 3, Cin)
    w_t = jnp.pad(w_t, ((0, 0), (0, Cout_p - Cout), (0, 0), (0, 0),
                        (0, Cin_p - Cin)))
    w3 = w_t.reshape(3, Cout_p, 9 * Cin_p).astype(mxu_dtype)

    b2d = jnp.pad(bias.astype(jnp.float32), (0, Cout_p - Cout)).reshape(Cout_p, 1)

    # Validity mask over padded-coordinate lanes (InstanceNorm stats only count
    # real voxels; garbage halo outputs are discarded after the kernel).
    p = jnp.arange(Lout_p)
    d_i = p // HpWp
    r = p - d_i * HpWp
    h_i = r // Wp
    w_i = r - h_i * Wp
    mask = ((d_i < D) & (h_i < H) & (w_i < W)).astype(jnp.float32).reshape(1, Lout_p)

    tCout = Cout_p if block_cout is None else int(block_cout)
    assert Cout_p % tCout == 0
    n_ct = Cout_p // tCout

    kernel = functools.partial(
        _cna3d_kernel, Wp=Wp, HpWp=HpWp, Cin_p=Cin_p, tCout=tCout,
        Lout_p=Lout_p, inv_n=1.0 / (D * H * W), use_norm=use_norm, eps=eps,
        negative_slope=negative_slope)

    flops = 2 * N * Cout * Cin * 27 * D * H * W
    bytes_accessed = (N * Cin_p * L_in * mxu_dtype.itemsize
                      + 3 * Cout_p * 9 * Cin_p * mxu_dtype.itemsize
                      + Cout_p * 4 + Lout_p * 4
                      + N * Cout_p * Lout_p * jnp.dtype(out_dtype).itemsize)

    out = pl.pallas_call(
        kernel,
        out_shape=jax.ShapeDtypeStruct((N, Cout_p, Lout_p), out_dtype),
        grid=(N, n_ct),
        in_specs=[
            pl.BlockSpec((1, Cin_p, L_in), lambda n, c: (n, 0, 0)),
            pl.BlockSpec((3, tCout, 9 * Cin_p), lambda n, c: (0, c, 0)),
            pl.BlockSpec((tCout, 1), lambda n, c: (c, 0)),
            pl.BlockSpec((1, Lout_p), lambda n, c: (0, 0)),
        ],
        out_specs=pl.BlockSpec((1, tCout, Lout_p), lambda n, c: (n, c, 0)),
        compiler_params=pltpu.CompilerParams(
            dimension_semantics=("parallel", "parallel"),
            vmem_limit_bytes=64 * 1024 * 1024),
        cost_estimate=pl.CostEstimate(
            flops=flops, transcendentals=0, bytes_accessed=bytes_accessed),
    )(x_flat, w3, b2d, mask)

    # Drop padded channels and garbage halo lanes: padded-coordinate slab
    # -> (N, Cout, D, Hp, Wp) -> valid (N, Cout, D, H, W).
    out = out[:, :Cout, :D * HpWp].reshape(N, Cout, D, Hp, Wp)[:, :, :, :H, :W]
    return out


# ----------------------------------------------------------------------------
# Pure-JAX reference (for correctness check)
# ----------------------------------------------------------------------------
def _ref_cna3d(x, weight, bias, norm_args, activation_args):
    y = lax.conv_general_dilated(
        x, weight, window_strides=(1, 1, 1),
        padding=((1, 1), (1, 1), (1, 1)),
        dimension_numbers=("NCDHW", "OIDHW", "NCDHW"))
    y = y + bias.reshape(1, -1, 1, 1, 1)
    if norm_args is not None:
        eps = float(norm_args.get("eps", 1e-5))
        mean = jnp.mean(y, axis=(2, 3, 4), keepdims=True)
        var = jnp.mean((y - mean) ** 2, axis=(2, 3, 4), keepdims=True)
        y = (y - mean) * lax.rsqrt(var + eps)
    if activation_args is not None:
        ns = float(activation_args.get("negative_slope", 0.01))
        y = jnp.where(y >= 0, y, y * ns)
    return y


# ----------------------------------------------------------------------------
# main
# ----------------------------------------------------------------------------
if __name__ == "__main__":
    key = jax.random.PRNGKey(0)
    kx, kw, kb = jax.random.split(key, 3)

    N, Cin, Cout, D, H, W = 2, 4, 8, 8, 8, 8

    x = jax.random.normal(kx, (N, Cin, D, H, W), jnp.float32)
    fan_in = Cin * 27
    weight = jax.random.normal(kw, (Cout, Cin, 3, 3, 3), jnp.float32) / np.sqrt(fan_in)
    bias = jax.random.normal(kb, (Cout,), jnp.float32) * 0.1

    # Config 1: module defaults (conv + bias only), f32 MXU operands.
    out1 = jax.block_until_ready(
        cna3d(x, weight, bias, norm_args=None, activation_args=None,
              mxu_dtype=jnp.float32))
    ref1 = _ref_cna3d(x, weight, bias, None, None)
    np.testing.assert_allclose(np.asarray(out1), np.asarray(ref1),
                               rtol=1e-3, atol=1e-3)
    assert out1.shape == (N, Cout, D, H, W)

    # Config 2: InstanceNorm3d + LeakyReLU, bf16 MXU operands with f32
    # accumulation and f32 epilogue -> bf16-level tolerance.
    norm_args = {"eps": 1e-5}
    act_args = {"negative_slope": 0.01}
    out2 = jax.block_until_ready(
        cna3d(x, weight, bias, norm_args=norm_args, activation_args=act_args,
              mxu_dtype=jnp.bfloat16))
    ref2 = _ref_cna3d(x, weight, bias, norm_args, act_args)
    np.testing.assert_allclose(np.asarray(out2), np.asarray(ref2),
                               rtol=2e-2, atol=2e-2)
    assert out2.shape == (N, Cout, D, H, W)

    print("KERNEL_OK")
</pallas_src>

<mosaic_0001>
module attributes {stable_mosaic.version = 11 : i64} {
  func.func @_cna3d_kernel(%arg0: i32, %arg1: i32, %arg2: memref<1x8x1152xf32, #tpu.memory_space<vmem>>, %arg3: memref<3x8x72xf32, #tpu.memory_space<vmem>>, %arg4: memref<8x1xf32, #tpu.memory_space<vmem>>, %arg5: memref<1x896xf32, #tpu.memory_space<vmem>>, %arg6: memref<1x8x896xf32, #tpu.memory_space<vmem>>) attributes {dimension_semantics = [#tpu.dimension_semantics<parallel>, #tpu.dimension_semantics<parallel>], iteration_bounds = array<i64: 2, 1>, scalar_prefetch = 0 : i64, scratch_operands = 0 : i64, tpu.core_type = #tpu.core_type<tc>, window_params = [{transform_indices = @transform_0, window_bounds = array<i64: 1, 8, 1152>}, {transform_indices = @transform_1, window_bounds = array<i64: 3, 8, 72>}, {transform_indices = @transform_2, window_bounds = array<i64: 8, 1>}, {pipeline_mode = #tpu.pipeline_mode<synchronous>, transform_indices = @transform_3, window_bounds = array<i64: 1, 896>}, {transform_indices = @transform_4, window_bounds = array<i64: 1, 8, 896>}]} {
    %c0 = arith.constant 0 : index
    %c0_0 = arith.constant 0 : index
    %c0_1 = arith.constant 0 : index
    %0 = vector.load %arg2[%c0, %c0_0, %c0_1] : memref<1x8x1152xf32, #tpu.memory_space<vmem>>, vector<1x8x896xf32>
    %1 = vector.shape_cast %0 : vector<1x8x896xf32> to vector<8x896xf32>
    %c0_2 = arith.constant 0 : index
    %c0_3 = arith.constant 0 : index
    %c1 = arith.constant 1 : index
    %2 = vector.load %arg2[%c0_2, %c0_3, %c1] : memref<1x8x1152xf32, #tpu.memory_space<vmem>>, vector<1x8x896xf32>
    %3 = vector.shape_cast %2 : vector<1x8x896xf32> to vector<8x896xf32>
    %c0_4 = arith.constant 0 : index
    %c0_5 = arith.constant 0 : index
    %c2 = arith.constant 2 : index
    %4 = vector.load %arg2[%c0_4, %c0_5, %c2] : memref<1x8x1152xf32, #tpu.memory_space<vmem>>, vector<1x8x896xf32>
    %5 = vector.shape_cast %4 : vector<1x8x896xf32> to vector<8x896xf32>
    %c0_6 = arith.constant 0 : index
    %c0_7 = arith.constant 0 : index
    %c10 = arith.constant 10 : index
    %6 = vector.load %arg2[%c0_6, %c0_7, %c10] : memref<1x8x1152xf32, #tpu.memory_space<vmem>>, vector<1x8x896xf32>
    %7 = vector.shape_cast %6 : vector<1x8x896xf32> to vector<8x896xf32>
    %c0_8 = arith.constant 0 : index
    %c0_9 = arith.constant 0 : index
    %c11 = arith.constant 11 : index
    %8 = vector.load %arg2[%c0_8, %c0_9, %c11] : memref<1x8x1152xf32, #tpu.memory_space<vmem>>, vector<1x8x896xf32>
    %9 = vector.shape_cast %8 : vector<1x8x896xf32> to vector<8x896xf32>
    %c0_10 = arith.constant 0 : index
    %c0_11 = arith.constant 0 : index
    %c12 = arith.constant 12 : index
    %10 = vector.load %arg2[%c0_10, %c0_11, %c12] : memref<1x8x1152xf32, #tpu.memory_space<vmem>>, vector<1x8x896xf32>
    %11 = vector.shape_cast %10 : vector<1x8x896xf32> to vector<8x896xf32>
    %c0_12 = arith.constant 0 : index
    %c0_13 = arith.constant 0 : index
    %c20 = arith.constant 20 : index
    %12 = vector.load %arg2[%c0_12, %c0_13, %c20] : memref<1x8x1152xf32, #tpu.memory_space<vmem>>, vector<1x8x896xf32>
    %13 = vector.shape_cast %12 : vector<1x8x896xf32> to vector<8x896xf32>
    %c0_14 = arith.constant 0 : index
    %c0_15 = arith.constant 0 : index
    %c21 = arith.constant 21 : index
    %14 = vector.load %arg2[%c0_14, %c0_15, %c21] : memref<1x8x1152xf32, #tpu.memory_space<vmem>>, vector<1x8x896xf32>
    %15 = vector.shape_cast %14 : vector<1x8x896xf32> to vector<8x896xf32>
    %c0_16 = arith.constant 0 : index
    %c0_17 = arith.constant 0 : index
    %c22 = arith.constant 22 : index
    %16 = vector.load %arg2[%c0_16, %c0_17, %c22] : memref<1x8x1152xf32, #tpu.memory_space<vmem>>, vector<1x8x896xf32>
    %17 = vector.shape_cast %16 : vector<1x8x896xf32> to vector<8x896xf32>
    %18 = tpu.concatenate %1, %3, %5, %7, %9, %11, %13, %15, %17 in 0 : vector<8x896xf32>, vector<8x896xf32>, vector<8x896xf32>, vector<8x896xf32>, vector<8x896xf32>, vector<8x896xf32>, vector<8x896xf32>, vector<8x896xf32>, vector<8x896xf32> -> vector<72x896xf32>
    %c0_18 = arith.constant 0 : index
    %c0_19 = arith.constant 0 : index
    %c0_20 = arith.constant 0 : index
    %19 = vector.load %arg3[%c0_18, %c0_19, %c0_20] : memref<3x8x72xf32, #tpu.memory_space<vmem>>, vector<1x8x72xf32>
    %20 = vector.shape_cast %19 : vector<1x8x72xf32> to vector<8x72xf32>
    %cst = arith.constant dense<0.000000e+00> : vector<8x896xf32>
    %21 = tpu.matmul %20, %18, %cst {dimension_numbers = #tpu.dot_dimension_numbers<[1], [0], [0], [1], [0, 0, 1, 1], [], []>} : vector<8x72xf32>, vector<72x896xf32>, vector<8x896xf32> -> vector<8x896xf32>
    %c0_21 = arith.constant 0 : index
    %c0_22 = arith.constant 0 : index
    %c100 = arith.constant 100 : index
    %22 = vector.load %arg2[%c0_21, %c0_22, %c100] : memref<1x8x1152xf32, #tpu.memory_space<vmem>>, vector<1x8x896xf32>
    %23 = vector.shape_cast %22 : vector<1x8x896xf32> to vector<8x896xf32>
    %c0_23 = arith.constant 0 : index
    %c0_24 = arith.constant 0 : index
    %c101 = arith.constant 101 : index
    %24 = vector.load %arg2[%c0_23, %c0_24, %c101] : memref<1x8x1152xf32, #tpu.memory_space<vmem>>, vector<1x8x896xf32>
    %25 = vector.shape_cast %24 : vector<1x8x896xf32> to vector<8x896xf32>
    %c0_25 = arith.constant 0 : index
    %c0_26 = arith.constant 0 : index
    %c102 = arith.constant 102 : index
    %26 = vector.load %arg2[%c0_25, %c0_26, %c102] : memref<1x8x1152xf32, #tpu.memory_space<vmem>>, vector<1x8x896xf32>
    %27 = vector.shape_cast %26 : vector<1x8x896xf32> to vector<8x896xf32>
    %c0_27 = arith.constant 0 : index
    %c0_28 = arith.constant 0 : index
    %c110 = arith.constant 110 : index
    %28 = vector.load %arg2[%c0_27, %c0_28, %c110] : memref<1x8x1152xf32, #tpu.memory_space<vmem>>, vector<1x8x896xf32>
    %29 = vector.shape_cast %28 : vector<1x8x896xf32> to vector<8x896xf32>
    %c0_29 = arith.constant 0 : index
    %c0_30 = arith.constant 0 : index
    %c111 = arith.constant 111 : index
    %30 = vector.load %arg2[%c0_29, %c0_30, %c111] : memref<1x8x1152xf32, #tpu.memory_space<vmem>>, vector<1x8x896xf32>
    %31 = vector.shape_cast %30 : vector<1x8x896xf32> to vector<8x896xf32>
    %c0_31 = arith.constant 0 : index
    %c0_32 = arith.constant 0 : index
    %c112 = arith.constant 112 : index
    %32 = vector.load %arg2[%c0_31, %c0_32, %c112] : memref<1x8x1152xf32, #tpu.memory_space<vmem>>, vector<1x8x896xf32>
    %33 = vector.shape_cast %32 : vector<1x8x896xf32> to vector<8x896xf32>
    %c0_33 = arith.constant 0 : index
    %c0_34 = arith.constant 0 : index
    %c120 = arith.constant 120 : index
    %34 = vector.load %arg2[%c0_33, %c0_34, %c120] : memref<1x8x1152xf32, #tpu.memory_space<vmem>>, vector<1x8x896xf32>
    %35 = vector.shape_cast %34 : vector<1x8x896xf32> to vector<8x896xf32>
    %c0_35 = arith.constant 0 : index
    %c0_36 = arith.constant 0 : index
    %c121 = arith.constant 121 : index
    %36 = vector.load %arg2[%c0_35, %c0_36, %c121] : memref<1x8x1152xf32, #tpu.memory_space<vmem>>, vector<1x8x896xf32>
    %37 = vector.shape_cast %36 : vector<1x8x896xf32> to vector<8x896xf32>
    %c0_37 = arith.constant 0 : index
    %c0_38 = arith.constant 0 : index
    %c122 = arith.constant 122 : index
    %38 = vector.load %arg2[%c0_37, %c0_38, %c122] : memref<1x8x1152xf32, #tpu.memory_space<vmem>>, vector<1x8x896xf32>
    %39 = vector.shape_cast %38 : vector<1x8x896xf32> to vector<8x896xf32>
    %40 = tpu.concatenate %23, %25, %27, %29, %31, %33, %35, %37, %39 in 0 : vector<8x896xf32>, vector<8x896xf32>, vector<8x896xf32>, vector<8x896xf32>, vector<8x896xf32>, vector<8x896xf32>, vector<8x896xf32>, vector<8x896xf32>, vector<8x896xf32> -> vector<72x896xf32>
    %c1_39 = arith.constant 1 : index
    %c0_40 = arith.constant 0 : index
    %c0_41 = arith.constant 0 : index
    %41 = vector.load %arg3[%c1_39, %c0_40, %c0_41] : memref<3x8x72xf32, #tpu.memory_space<vmem>>, vector<1x8x72xf32>
    %42 = vector.shape_cast %41 : vector<1x8x72xf32> to vector<8x72xf32>
    %cst_42 = arith.constant dense<0.000000e+00> : vector<8x896xf32>
    %43 = tpu.matmul %42, %40, %cst_42 {dimension_numbers = #tpu.dot_dimension_numbers<[1], [0], [0], [1], [0, 0, 1, 1], [], []>} : vector<8x72xf32>, vector<72x896xf32>, vector<8x896xf32> -> vector<8x896xf32>
    %44 = arith.addf %21, %43 : vector<8x896xf32>
    %c0_43 = arith.constant 0 : index
    %c0_44 = arith.constant 0 : index
    %c200 = arith.constant 200 : index
    %45 = vector.load %arg2[%c0_43, %c0_44, %c200] : memref<1x8x1152xf32, #tpu.memory_space<vmem>>, vector<1x8x896xf32>
    %46 = vector.shape_cast %45 : vector<1x8x896xf32> to vector<8x896xf32>
    %c0_45 = arith.constant 0 : index
    %c0_46 = arith.constant 0 : index
    %c201 = arith.constant 201 : index
    %47 = vector.load %arg2[%c0_45, %c0_46, %c201] : memref<1x8x1152xf32, #tpu.memory_space<vmem>>, vector<1x8x896xf32>
    %48 = vector.shape_cast %47 : vector<1x8x896xf32> to vector<8x896xf32>
    %c0_47 = arith.constant 0 : index
    %c0_48 = arith.constant 0 : index
    %c202 = arith.constant 202 : index
    %49 = vector.load %arg2[%c0_47, %c0_48, %c202] : memref<1x8x1152xf32, #tpu.memory_space<vmem>>, vector<1x8x896xf32>
    %50 = vector.shape_cast %49 : vector<1x8x896xf32> to vector<8x896xf32>
    %c0_49 = arith.constant 0 : index
    %c0_50 = arith.constant 0 : index
    %c210 = arith.constant 210 : index
    %51 = vector.load %arg2[%c0_49, %c0_50, %c210] : memref<1x8x1152xf32, #tpu.memory_space<vmem>>, vector<1x8x896xf32>
    %52 = vector.shape_cast %51 : vector<1x8x896xf32> to vector<8x896xf32>
    %c0_51 = arith.constant 0 : index
    %c0_52 = arith.constant 0 : index
    %c211 = arith.constant 211 : index
    %53 = vector.load %arg2[%c0_51, %c0_52, %c211] : memref<1x8x1152xf32, #tpu.memory_space<vmem>>, vector<1x8x896xf32>
    %54 = vector.shape_cast %53 : vector<1x8x896xf32> to vector<8x896xf32>
    %c0_53 = arith.constant 0 : index
    %c0_54 = arith.constant 0 : index
    %c212 = arith.constant 212 : index
    %55 = vector.load %arg2[%c0_53, %c0_54, %c212] : memref<1x8x1152xf32, #tpu.memory_space<vmem>>, vector<1x8x896xf32>
    %56 = vector.shape_cast %55 : vector<1x8x896xf32> to vector<8x896xf32>
    %c0_55 = arith.constant 0 : index
    %c0_56 = arith.constant 0 : index
    %c220 = arith.constant 220 : index
    %57 = vector.load %arg2[%c0_55, %c0_56, %c220] : memref<1x8x1152xf32, #tpu.memory_space<vmem>>, vector<1x8x896xf32>
    %58 = vector.shape_cast %57 : vector<1x8x896xf32> to vector<8x896xf32>
    %c0_57 = arith.constant 0 : index
    %c0_58 = arith.constant 0 : index
    %c221 = arith.constant 221 : index
    %59 = vector.load %arg2[%c0_57, %c0_58, %c221] : memref<1x8x1152xf32, #tpu.memory_space<vmem>>, vector<1x8x896xf32>
    %60 = vector.shape_cast %59 : vector<1x8x896xf32> to vector<8x896xf32>
    %c0_59 = arith.constant 0 : index
    %c0_60 = arith.constant 0 : index
    %c222 = arith.constant 222 : index
    %61 = vector.load %arg2[%c0_59, %c0_60, %c222] : memref<1x8x1152xf32, #tpu.memory_space<vmem>>, vector<1x8x896xf32>
    %62 = vector.shape_cast %61 : vector<1x8x896xf32> to vector<8x896xf32>
    %63 = tpu.concatenate %46, %48, %50, %52, %54, %56, %58, %60, %62 in 0 : vector<8x896xf32>, vector<8x896xf32>, vector<8x896xf32>, vector<8x896xf32>, vector<8x896xf32>, vector<8x896xf32>, vector<8x896xf32>, vector<8x896xf32>, vector<8x896xf32> -> vector<72x896xf32>
    %c2_61 = arith.constant 2 : index
    %c0_62 = arith.constant 0 : index
    %c0_63 = arith.constant 0 : index
    %64 = vector.load %arg3[%c2_61, %c0_62, %c0_63] : memref<3x8x72xf32, #tpu.memory_space<vmem>>, vector<1x8x72xf32>
    %65 = vector.shape_cast %64 : vector<1x8x72xf32> to vector<8x72xf32>
    %cst_64 = arith.constant dense<0.000000e+00> : vector<8x896xf32>
    %66 = tpu.matmul %65, %63, %cst_64 {dimension_numbers = #tpu.dot_dimension_numbers<[1], [0], [0], [1], [0, 0, 1, 1], [], []>} : vector<8x72xf32>, vector<72x896xf32>, vector<8x896xf32> -> vector<8x896xf32>
    %67 = arith.addf %44, %66 : vector<8x896xf32>
    %c0_65 = arith.constant 0 : index
    %c0_66 = arith.constant 0 : index
    %68 = vector.load %arg4[%c0_65, %c0_66] : memref<8x1xf32, #tpu.memory_space<vmem>>, vector<8x1xf32>
    %69 = vector.broadcast %68 : vector<8x1xf32> to vector<8x896xf32>
    %70 = arith.addf %67, %69 : vector<8x896xf32>
    %71 = vector.shape_cast %70 : vector<8x896xf32> to vector<1x8x896xf32>
    %c0_67 = arith.constant 0 : index
    %c0_68 = arith.constant 0 : index
    %c0_69 = arith.constant 0 : index
    %72 = vector.load %arg6[%c0_67, %c0_68, %c0_69] : memref<1x8x896xf32, #tpu.memory_space<vmem>>, vector<1x8x896xf32>
    tpu.vector_store %arg6[%c0_67, %c0_68, %c0_69], %71 {strides = array<i32>} : memref<1x8x896xf32, #tpu.memory_space<vmem>>, vector<1x8x896xf32>,
    return
  }
  func.func @transform_0(%arg0: i32, %arg1: i32) -> (i32, i32, i32) {
    %c0_i32 = arith.constant 0 : i32
    %c0_i32_0 = arith.constant 0 : i32
    %c0_i32_1 = arith.constant 0 : i32
    return %arg0, %c0_i32, %c0_i32_0 : i32, i32, i32
  }
  func.func @transform_1(%arg0: i32, %arg1: i32) -> (i32, i32, i32) {
    %c0_i32 = arith.constant 0 : i32
    %c0_i32_0 = arith.constant 0 : i32
    %c0_i32_1 = arith.constant 0 : i32
    return %c0_i32, %arg1, %c0_i32_0 : i32, i32, i32
  }
  func.func @transform_2(%arg0: i32, %arg1: i32) -> (i32, i32) {
    %c0_i32 = arith.constant 0 : i32
    %c0_i32_0 = arith.constant 0 : i32
    return %arg1, %c0_i32 : i32, i32
  }
  func.func @transform_3(%arg0: i32, %arg1: i32) -> (i32, i32) {
    %c0_i32 = arith.constant 0 : i32
    %c0_i32_0 = arith.constant 0 : i32
    %c0_i32_1 = arith.constant 0 : i32
    return %c0_i32, %c0_i32_0 : i32, i32
  }
  func.func @transform_4(%arg0: i32, %arg1: i32) -> (i32, i32, i32) {
    %c0_i32 = arith.constant 0 : i32
    %c0_i32_0 = arith.constant 0 : i32
    return %arg0, %arg1, %c0_i32 : i32, i32, i32
  }
}

</mosaic_0001>

<bundles_post_ra>
// kernel: tpu_custom_call.1
= control target key start
LH: loop header
LB: loop body
LE: loop exit
PB: predicated region body
PF: predicated region fallthrough
CT: control target
= control target key end

     0   :  { %9 = vsyncpa [#allocation3], 0  ;;  %s4298_s0 = inlined_call_operand.hbm [shape: f32[2,8,1152], index: 0, kind: input, shape index: {}]   ;;  %s4299_s1 = inlined_call_operand.hbm [shape: f32[3,8,72], index: 1, kind: input, shape index: {}]   ;;  %s4300_s2 = inlined_call_operand.vmem [shape: f32[8,1], index: 2, kind: input, shape index: {}]   ;;  %s4301_s3 = inlined_call_operand.vmem [shape: f32[1,896], index: 3, kind: input, shape index: {}]   ;;  %s4302_s4 = inlined_call_operand.hbm [shape: f32[2,8,896], index: 4, kind: output, shape index: {}]  }
   0x1   :  { %11 = vsyncpa [#allocation3 + $0x1], 0 }
   0x2   :  { %12 = vsyncpa [#allocation6], 0 }
   0x3   :  { %13 = vsyncpa [#allocation4], 0 }
   0x4   :  { %15 = vsyncpa [#allocation4 + $0x1], 0  ;;  %s2691_s15 = smov 0   ;;  %s2693_s16 = smov 0  }
   0x5   :  { %s2695_s17 = smov 0   ;;  %s2697_s18 = smov 0  }
   0x6   :  { %s2699_s19 = smov 0   ;;  %s2701_s20 = smov 0  }
   0x7 LB: > { %s2289_s3 = sadd.s32 4294967295, %s2646_s20   ;;  %s2290_s21 = sadd.s32 4294967294, %s2646_s20   ;;  %s2646_s20 = sphi %s2701_s20, %s21_s20   ;;  %s2642_s19 = sphi %s2699_s19, %s4449_s19   ;;  %s2638_s18 = sphi %s2697_s18, %s4448_s18   ;;  %s2634_s17 = sphi %s2695_s17, %s4447_s17   ;;  %s2630_s16 = sphi %s2693_s16, %s4446_s16   ;;  %s2626_s15 = sphi %s2691_s15, %s4445_s15  }
   0x8   : > { %p53_p0 = scmp.ne.s32.totalorder %s2630_s16, %s2626_s15  ;;  %p2725_p1 = scmp.eq.s32.totalorder %s2289_s3, 0 }
   0x9   : > { %p2729_p2 = scmp.eq.s32.totalorder %s2289_s3, 1  ;;  %p158_p3 = scmp.eq.s32.totalorder %s2290_s21, 1 }
   0xa   : > { %p2735_p4 = por %p2725_p1, %p53_p0  ;;  %p2291_p5 = scmp.ge.s32.totalorder %s2646_s20, 1 }
   0xb   : > { %p2740_p6 = por %p158_p3, %p53_p0  ;;  %p165_p7 = scmp.lt.s32.totalorder %s2646_s20, 3 }
   0xc   : > { %s4350_s24 = scalar_select %p2735_p4, 1, 0 }
   0xd   : > { %s4351_s25 = scalar_select %p2740_p6, 1, 0 }
   0xe   : > { %p2745_p8 = pnand %p2291_p5, %p165_p7  ;;  %s2648_s27 = smov [#allocation5]  }
   0xf   : > { %s179_s28 = sshll.u32 %s2648_s27, 4  ;;  %p2294_p10 = scmp.ge.s32.totalorder %s2646_s20, 2  ;;  %s180_s28 = int_to_ptr.vmem [resolvable:$true] %s179_s28 }
  0x10   : > { %p2419_p9 = pneg %p2745_p8  ;;  %s33_s30 = sadd.s32 1, %s2642_s19 }
  0x11   : > { %s2519_s5 = scalar_lea.vmem %s180_s28, 384  ;;  %p2527_p5 = scmp.lt.s32.totalorder %s180_s28, %s180_s28 }
  0x12   : > { %p2754_p11 = pnand %p2419_p9, %p2725_p1  ;;  %p2520_p13 = scmp.ne.s32.totalorder %s180_s28, %s2519_s5 }
  0x13   : > { %p2528_p7 = scmp.lt.s32.totalorder %s2519_s5, %s2519_s5 }
  0x14   : > { %p2510_p12 = pneg %p2754_p11 }
  0x15   : > { %p2529_p6 = por %p2528_p7, %p2527_p5 }
  0x16   : > { %p2522_p0 = pnand %p2520_p13, %p2510_p12 }
  0x18   : > { %p2523_p3 = pneg %p2522_p0 }
  0x1a   : > { %p2530_p4 = pnand %p2529_p6, %p2523_p3 }
  0x1c   : > { %2533 = shalt.err (!%p2530_p4)
}
  0x1d   : > { %s2649_s6 = smov 128   ;;  %s2650_s7 = smov 8  }
  0x1e   : > { %2422 = dma.hbm_to_vmem [thread:$0]  (!%p2754_p11), %s4299_s1, 384, %s180_s28, [#allocation6], %s2649_s6, %s2649_s6, %s2650_s7  }
  0x1f   : > { %p35_p6 = scmp.ge.s32.totalorder %s33_s30, 2  ;;  %s40_s10 = sadd.s32 1, %s2634_s17 }
  0x20   : > { %p47_p4 = scmp.ne.s32.totalorder %s2634_s17, %s2630_s16  ;;  %p48_p9 = scmp.eq.s32.totalorder %s2646_s20, 0 }
  0x21   : > { %s4451_s30 = smov (%p35_p6, %s33_s30), 0  ;;  %p2432_p0 = scmp.lt.s32.totalorder %s2646_s20, 2 }
  0x22   : > { %p49_p12 = por %p48_p9, %p47_p4  ;;  %p2774_p13 = por %p2729_p2, %p47_p4 }
  0x23   : > { %s37_s12 = ssub.s32 %s2642_s19, %s4451_s30  ;;  %s203_s13 = sand.u32 1, %s2634_s17  }
  0x24   : > { %p38_p3 = scmp.eq.s32.totalorder %s37_s12, 0  ;;  %s2406_s14 = smul.u32 72, %s203_s13 }
  0x25   : > { %s2407_s21 = smul.u32 1152, %s2642_s19  ;;  %p2786_p11 = pnand %p2432_p0, %p49_p12 }
  0x26   : > { %s2783_s3 = scalar_select %p38_p3, %s2634_s17, %s40_s10  }
  0x27   : > { %s207_s27 = scalar_lea.vmem [#allocation2], %s2406_s14  ;;  %s213_s6 = scalar_lea.hbm %s4298_s0, %s2407_s21 }
  0x28   : > { %s215_s28 = sshll.u32 %s207_s27, 4  ;;  %s204_s7 = scalar_lea.sflag [#allocation3], %s203_s13  ;;  %s216_s28 = int_to_ptr.vmem [resolvable:$true] %s215_s28 }
  0x29   : > { %p2536_p2 = pneg %p2786_p11  ;;  %s2547_s8 = scalar_lea.vmem %s216_s28, 1152 }
  0x2a   : > { %p2548_p5 = scmp.ne.s32.totalorder %s216_s28, %s2547_s8  ;;  %s2651_s9 = smov [#allocation2]  }
  0x2b   : > { %s2552_s10 = sshll.u32 %s2651_s9, 4  ;;  %s2553_s10 = int_to_ptr.vmem [resolvable:$false] %s2552_s10 }
  0x2c   : > { %p2550_p7 = pnand %p2548_p5, %p2536_p2  ;;  %s2554_s12 = scalar_lea.vmem %s2553_s10, 2304 }
  0x2d   : > { %p2555_p4 = scmp.lt.s32.totalorder %s216_s28, %s2553_s10  ;;  %p2556_p9 = scmp.lt.s32.totalorder %s2554_s12, %s2547_s8 }
  0x2e   : > { %p2551_p6 = pneg %p2550_p7 }
  0x2f   : > { %p2557_p12 = por %p2556_p9, %p2555_p4 }
  0x31   : > { %p2558_p0 = pnand %p2557_p12, %p2551_p6 }
  0x33   : > { %2561 = shalt.err (!%p2558_p0)
}
  0x34   : > { %2426 = dma.hbm_to_vmem [thread:$0]  (!%p2786_p11), %s213_s6, 1152, %s216_s28, %s204_s7  }
  0x35   : > { %224 = sbr.rel (%p2745_p8) target bundleno = 996 (0x3e4), region = 36 }
  0x3a   : > { %s2800_s13 = sand.u32 1, %s2630_s16   ;;  %p4356_p3 = scmp.ne.s32.totalorder %s4350_s24, 0 }
  0x3b   : > { %s2408_s14 = smul.u32 72, %s2800_s13  ;;  %s227_s21 = scalar_lea.sflag [#allocation3], %s2800_s13 }
  0x3d   : > { %s2804_s27 = scalar_lea.vmem [#allocation2], %s2408_s14 }
  0x3e   : > { %2613 = dma.done.wait (%p4356_p3), %s227_s21, 1152  }
  0x3f   : > { %2615 = vsyncadd (%p4356_p3), %s227_s21, 4294966144 }
  0x40   : > { %2617 = dma.done.wait (%p2725_p1), [#allocation6], 384  }
  0x41   : > { %2619 = vsyncadd (%p2725_p1), [#allocation6], 4294966912  ;;  %v2815_v0 = vld [vmem:[%s2804_s27 + $0x10] sm:$0xff]  ;;  %v2818_v1 = vld [vmem:[%s2804_s27] sm:$0xff]  ;;  %s2652_s24 = smov 127   ;;  %s2653_s22 = smov 126  }
  0x42   : > { %287 = vrot.lane.b32.xlu1 %v2815_v0, %s2652_s24  ;;  %283 = vrot.lane.b32.xlu0 %v2818_v1, %s2652_s24  ;;  %v2825_v2 = vld [vmem:[%s2804_s27 + $0x18] sm:$0xff]  ;;  %v2828_v3 = vld [vmem:[%s2804_s27 + $0x8] sm:$0xff]  ;;  %s2654_s26 = smov 118   ;;  %s2655_s28 = smov 117   ;;  %vm299_vm0 = vcmask 1039360   ;;  %vm330_vm1 = vcmask 1031168  }
  0x43   : > { %v2835_v4 = vld [vmem:[%s2804_s27 + $0x28] sm:$0xff]  ;;  %v2838_v5 = vld [vmem:[%s2804_s27 + $0x20] sm:$0xff]  ;;  %v2845_v6 = vld [vmem:[%s2804_s27 + $0x38] sm:$0xff]  ;;  %s2656_s29 = smov 116   ;;  %s2657_s5 = smov 108   ;;  %vm361_vm2 = vcmask 965632  }
  0x44   : > { %v2848_v7 = vld [vmem:[%s2804_s27 + $0x30] sm:$0xff]  ;;  %s2658_s23 = smov 107   ;;  %s2659_s6 = smov 106   ;;  %vm516_vm3 = vcmask 867328   ;;  %vm485_vm4 = vcmask 875520   ;;  %vm454_vm5 = vcmask 883712  }
  0x45   : > { %s2660_s7 = smov 28   ;;  %vm423_vm6 = vcmask 949248   ;;  %vm392_vm7 = vcmask 957440   ;;  %vm678_vm8 = vcmask 228352   ;;  %vm805_vm9 = vcmask 588800   ;;  %s2663_s8 = smov 56  }
  0x46   : > { %289 = vrot.lane.b32.xlu1 %v2825_v2, %s2652_s24  ;;  %285 = vrot.lane.b32.xlu0 %v2828_v3, %s2652_s24  ;;  %vm2662_vm10 = vmmov 0   ;;  %vm1724_vm11 = vcmask 457728   ;;  %s2409_s12 = smul.u32 56, %s2800_s13 }
  0x47   : > { %s2410_s21 = smul.u32 896, %s2638_s18 }
  0x48   : > { %s262_s14 = scalar_lea.vmem [#allocation7], %s2409_s12 }
  0x4a   : > { %293 = vrot.lane.b32.xlu1 %v2835_v4, %s2652_s24  ;;  %291 = vrot.lane.b32.xlu0 %v2838_v5, %s2652_s24 }
  0x4e   : > { %297 = vrot.lane.b32.xlu1 %v2845_v6, %s2652_s24  ;;  %295 = vrot.lane.b32.xlu0 %v2848_v7, %s2652_s24 }
  0x52   : > { %316 = vrot.lane.b32.xlu1 %v2828_v3, %s2653_s22  ;;  %314 = vrot.lane.b32.xlu0 %v2818_v1, %s2653_s22 }
  0x56   : > { %320 = vrot.lane.b32.xlu1 %v2825_v2, %s2653_s22  ;;  %318 = vrot.lane.b32.xlu0 %v2815_v0, %s2653_s22 }
  0x5a   : > { %324 = vrot.lane.b32.xlu1 %v2835_v4, %s2653_s22  ;;  %322 = vrot.lane.b32.xlu0 %v2838_v5, %s2653_s22 }
  0x5e   : > { %328 = vrot.lane.b32.xlu1 %v2845_v6, %s2653_s22  ;;  %326 = vrot.lane.b32.xlu0 %v2848_v7, %s2653_s22 }
  0x62   : > { %347 = vrot.lane.b32.xlu1 %v2828_v3, %s2654_s26  ;;  %345 = vrot.lane.b32.xlu0 %v2818_v1, %s2654_s26 }
  0x66   : > { %351 = vrot.lane.b32.xlu1 %v2825_v2, %s2654_s26  ;;  %349 = vrot.lane.b32.xlu0 %v2815_v0, %s2654_s26 }
  0x6a   : > { %355 = vrot.lane.b32.xlu1 %v2835_v4, %s2654_s26  ;;  %353 = vrot.lane.b32.xlu0 %v2838_v5, %s2654_s26 }
  0x6e   : > { %359 = vrot.lane.b32.xlu1 %v2845_v6, %s2654_s26  ;;  %357 = vrot.lane.b32.xlu0 %v2848_v7, %s2654_s26 }
  0x72   : > { %378 = vrot.lane.b32.xlu1 %v2828_v3, %s2655_s28  ;;  %376 = vrot.lane.b32.xlu0 %v2818_v1, %s2655_s28 }
  0x76   : > { %382 = vrot.lane.b32.xlu1 %v2825_v2, %s2655_s28  ;;  %380 = vrot.lane.b32.xlu0 %v2815_v0, %s2655_s28 }
  0x7a   : > { %386 = vrot.lane.b32.xlu1 %v2835_v4, %s2655_s28  ;;  %384 = vrot.lane.b32.xlu0 %v2838_v5, %s2655_s28 }
  0x7e   : > { %390 = vrot.lane.b32.xlu1 %v2845_v6, %s2655_s28  ;;  %388 = vrot.lane.b32.xlu0 %v2848_v7, %s2655_s28 }
  0x82   : > { %409 = vrot.lane.b32.xlu1 %v2828_v3, %s2656_s29  ;;  %407 = vrot.lane.b32.xlu0 %v2818_v1, %s2656_s29 }
  0x86   : > { %413 = vrot.lane.b32.xlu1 %v2825_v2, %s2656_s29  ;;  %411 = vrot.lane.b32.xlu0 %v2815_v0, %s2656_s29 }
  0x8a   : > { %417 = vrot.lane.b32.xlu1 %v2835_v4, %s2656_s29  ;;  %415 = vrot.lane.b32.xlu0 %v2838_v5, %s2656_s29 }
  0x8e   : > { %421 = vrot.lane.b32.xlu1 %v2845_v6, %s2656_s29  ;;  %419 = vrot.lane.b32.xlu0 %v2848_v7, %s2656_s29 }
  0x92   : > { %440 = vrot.lane.b32.xlu1 %v2828_v3, %s2657_s5  ;;  %438 = vrot.lane.b32.xlu0 %v2818_v1, %s2657_s5 }
  0x96   : > { %444 = vrot.lane.b32.xlu1 %v2825_v2, %s2657_s5  ;;  %442 = vrot.lane.b32.xlu0 %v2815_v0, %s2657_s5 }
  0x9a   : > { %448 = vrot.lane.b32.xlu1 %v2835_v4, %s2657_s5  ;;  %446 = vrot.lane.b32.xlu0 %v2838_v5, %s2657_s5 }
  0x9e   : > { %452 = vrot.lane.b32.xlu1 %v2845_v6, %s2657_s5  ;;  %450 = vrot.lane.b32.xlu0 %v2848_v7, %s2657_s5 }
  0xa2   : > { %471 = vrot.lane.b32.xlu1 %v2828_v3, %s2658_s23  ;;  %469 = vrot.lane.b32.xlu0 %v2818_v1, %s2658_s23 }
  0xa6   : > { %475 = vrot.lane.b32.xlu1 %v2825_v2, %s2658_s23  ;;  %473 = vrot.lane.b32.xlu0 %v2815_v0, %s2658_s23 }
  0xaa   : > { %479 = vrot.lane.b32.xlu1 %v2835_v4, %s2658_s23  ;;  %477 = vrot.lane.b32.xlu0 %v2838_v5, %s2658_s23 }
  0xae   : > { %483 = vrot.lane.b32.xlu1 %v2845_v6, %s2658_s23  ;;  %481 = vrot.lane.b32.xlu0 %v2848_v7, %s2658_s23 }
  0xb2   : > { %502 = vrot.lane.b32.xlu1 %v2828_v3, %s2659_s6  ;;  %500 = vrot.lane.b32.xlu0 %v2818_v1, %s2659_s6 }
  0xb4   : > { %v288_v8 = vpop.permute.xlu1 %287  ;;  %v284_v9 = vpop.permute.xlu0 %283 }
  0xb6   : > { %506 = vrot.lane.b32.xlu1 %v2825_v2, %s2659_s6  ;;  %504 = vrot.lane.b32.xlu0 %v2815_v0, %s2659_s6 }
  0xb8   : > { %v290_v10 = vpop.permute.xlu1 %289  ;;  %v286_v11 = vpop.permute.xlu0 %285 }
  0xb9   : > { %v2983_v24 = vsel %vm299_vm0, %v286_v11, %v288_v8  ;;  %v2986_v25 = vsel %vm299_vm0, %v284_v9, %v286_v11  ;;  %v2993_v28 = vsel %vm299_vm0, %v288_v8, %v290_v10 }
  0xba   : > { %510 = vrot.lane.b32.xlu1 %v2835_v4, %s2659_s6  ;;  %508 = vrot.lane.b32.xlu0 %v2838_v5, %s2659_s6  ;;  %4357 = vst [vmem:[#allocation11_spill] sm:$0xff] %v2983_v24  ;;  %4358 = vst [vmem:[#allocation12_spill] sm:$0xff] %v2986_v25 }
  0xbb   : > { %4359 = vst [vmem:[#allocation13_spill] sm:$0xff] %v2993_v28 }
  0xbc   : > { %v294_v12 = vpop.permute.xlu1 %293  ;;  %v292_v13 = vpop.permute.xlu0 %291 }
  0xbd   : > { %v2996_v29 = vsel %vm299_vm0, %v290_v10, %v292_v13  ;;  %v3005_v32 = vsel %vm299_vm0, %v292_v13, %v294_v12 }
  0xbe   : > { %514 = vrot.lane.b32.xlu1 %v2845_v6, %s2659_s6  ;;  %512 = vrot.lane.b32.xlu0 %v2848_v7, %s2659_s6  ;;  %4360 = vst [vmem:[#allocation14_spill] sm:$0xff] %v2996_v29  ;;  %4361 = vst [vmem:[#allocation15_spill] sm:$0xff] %v3005_v32 }
  0xc0   : > { %v298_v14 = vpop.permute.xlu1 %297  ;;  %v296_v15 = vpop.permute.xlu0 %295 }
  0xc1   : > { %v3008_v33 = vsel %vm299_vm0, %v294_v12, %v296_v15  ;;  %v3019_v36 = vsel %vm299_vm0, %v296_v15, %v298_v14 }
  0xc2   : > { %536 = vrot.lane.b32.xlu1 %v2828_v3, %s2660_s7  ;;  %534 = vrot.lane.b32.xlu0 %v2818_v1, %s2660_s7  ;;  %4362 = vst [vmem:[#allocation16_spill] sm:$0xff] %v3008_v33  ;;  %4363 = vst [vmem:[#allocation17_spill] sm:$0xff] %v3019_v36 }
  0xc4   : > { %v317_v16 = vpop.permute.xlu1 %316  ;;  %v315_v17 = vpop.permute.xlu0 %314 }
  0xc5   : > { %v3029_v39 = vsel %vm330_vm1, %v315_v17, %v317_v16 }
  0xc6   : > { %540 = vrot.lane.b32.xlu1 %v2825_v2, %s2660_s7  ;;  %538 = vrot.lane.b32.xlu0 %v2815_v0, %s2660_s7  ;;  %4364 = vst [vmem:[#allocation18_spill] sm:$0xff] %v3029_v39 }
  0xc8   : > { %v321_v18 = vpop.permute.xlu1 %320  ;;  %v319_v19 = vpop.permute.xlu0 %318 }
  0xc9   : > { %v3032_v40 = vsel %vm330_vm1, %v317_v16, %v319_v19  ;;  %v3043_v43 = vsel %vm330_vm1, %v319_v19, %v321_v18 }
  0xca   : > { %544 = vrot.lane.b32.xlu1 %v2835_v4, %s2660_s7  ;;  %542 = vrot.lane.b32.xlu0 %v2838_v5, %s2660_s7  ;;  %4365 = vst [vmem:[#allocation19_spill] sm:$0xff] %v3032_v40  ;;  %4366 = vst [vmem:[#allocation20_spill] sm:$0xff] %v3043_v43 }
  0xcc   : > { %v325_v20 = vpop.permute.xlu1 %324  ;;  %v323_v21 = vpop.permute.xlu0 %322 }
  0xcd   : > { %v3046_v44 = vsel %vm330_vm1, %v321_v18, %v323_v21  ;;  %v3057_v47 = vsel %vm330_vm1, %v323_v21, %v325_v20 }
  0xce   : > { %548 = vrot.lane.b32.xlu1 %v2845_v6, %s2660_s7  ;;  %546 = vrot.lane.b32.xlu0 %v2848_v7, %s2660_s7  ;;  %4367 = vst [vmem:[#allocation21_spill] sm:$0xff] %v3046_v44  ;;  %4368 = vst [vmem:[#allocation22_spill] sm:$0xff] %v3057_v47 }
  0xd0   : > { %v329_v22 = vpop.permute.xlu1 %328  ;;  %v327_v23 = vpop.permute.xlu0 %326 }
  0xd1   : > { %v3060_v48 = vsel %vm330_vm1, %v325_v20, %v327_v23  ;;  %v3071_v51 = vsel %vm330_vm1, %v327_v23, %v329_v22 }
  0xd2   : > { %552 = vrot.lane.b32.xlu1 %v2983_v24, %s2660_s7  ;;  %550 = vrot.lane.b32.xlu0 %v2986_v25, %s2660_s7  ;;  %4369 = vst [vmem:[#allocation23_spill] sm:$0xff] %v3060_v48  ;;  %4370 = vst [vmem:[#allocation24_spill] sm:$0xff] %v3071_v51 }
  0xd4   : > { %v348_v26 = vpop.permute.xlu1 %347  ;;  %v346_v27 = vpop.permute.xlu0 %345 }
  0xd5   : > { %v3081_v54 = vsel %vm361_vm2, %v346_v27, %v348_v26 }
  0xd6   : > { %554 = vrot.lane.b32.xlu0 %v2993_v28, %s2660_s7  ;;  %556 = vrot.lane.b32.xlu1 %v2996_v29, %s2660_s7  ;;  %4371 = vst [vmem:[#allocation25_spill] sm:$0xff] %v3081_v54 }
  0xd8   : > { %v3002_v30 = vpop.permute.xlu1 %351  ;;  %v350_v31 = vpop.permute.xlu0 %349 }
  0xd9   : > { %v3084_v55 = vsel %vm361_vm2, %v348_v26, %v350_v31  ;;  %v3096_v58 = vsel %vm361_vm2, %v350_v31, %v3002_v30 }
  0xda   : > { %558 = vrot.lane.b32.xlu0 %v3005_v32, %s2660_s7  ;;  %560 = vrot.lane.b32.xlu1 %v3008_v33, %s2660_s7  ;;  %4372 = vst [vmem:[#allocation26_spill] sm:$0xff] %v3084_v55  ;;  %4373 = vst [vmem:[#allocation27_spill] sm:$0xff] %v3096_v58 }
  0xdc   : > { %v3014_v34 = vpop.permute.xlu1 %355  ;;  %v3016_v35 = vpop.permute.xlu0 %353 }
  0xde   : > { %562 = vrot.lane.b32.xlu0 %v3019_v36, %s2660_s7  ;;  %564 = vrot.lane.b32.xlu1 %v298_v14, %s2660_s7 }
  0xe0   : > { %v3024_v37 = vpop.permute.xlu1 %359  ;;  %v3026_v38 = vpop.permute.xlu0 %357 }
  0xe2   : > { %566 = vrot.lane.b32.xlu0 %v3029_v39, %s2660_s7  ;;  %568 = vrot.lane.b32.xlu1 %v3032_v40, %s2660_s7 }
  0xe4   : > { %v3038_v41 = vpop.permute.xlu1 %378  ;;  %v3040_v42 = vpop.permute.xlu0 %376 }
  0xe6   : > { %570 = vrot.lane.b32.xlu0 %v3043_v43, %s2660_s7  ;;  %572 = vrot.lane.b32.xlu1 %v3046_v44, %s2660_s7 }
  0xe8   : > { %v3052_v45 = vpop.permute.xlu1 %382  ;;  %v3054_v46 = vpop.permute.xlu0 %380 }
  0xea   : > { %574 = vrot.lane.b32.xlu0 %v3057_v47, %s2660_s7  ;;  %576 = vrot.lane.b32.xlu1 %v3060_v48, %s2660_s7 }
  0xec   : > { %v3066_v49 = vpop.permute.xlu1 %386  ;;  %v3068_v50 = vpop.permute.xlu0 %384 }
  0xee   : > { %578 = vrot.lane.b32.xlu0 %v3071_v51, %s2660_s7  ;;  %580 = vrot.lane.b32.xlu1 %v329_v22, %s2660_s7 }
  0xf0   : > { %v3076_v52 = vpop.permute.xlu1 %390  ;;  %v3078_v53 = vpop.permute.xlu0 %388 }
  0xf2   : > { %582 = vrot.lane.b32.xlu0 %v3081_v54, %s2660_s7  ;;  %584 = vrot.lane.b32.xlu1 %v3084_v55, %s2660_s7 }
  0xf4   : > { %v3090_v56 = vpop.permute.xlu1 %409  ;;  %v3092_v57 = vpop.permute.xlu0 %407 }
  0xf6   : > { %586 = vrot.lane.b32.xlu0 %v3096_v58, %s2660_s7  ;;  %v3262_v58 = vsel %vm392_vm7, %v3040_v42, %v3038_v41  ;;  %v3285_v42 = vsel %vm361_vm2, %v3002_v30, %v3016_v35 }
  0xf7   : > { %4388 = vst [vmem:[#allocation42_spill] sm:$0xff] %v3262_v58  ;;  %4391 = vst [vmem:[#allocation45_spill] sm:$0xff] %v3285_v42 }
  0xf8   : > { %v3100_v59 = vpop.permute.xlu1 %413  ;;  %v412_v60 = vpop.permute.xlu0 %411 }
  0xfc   : > { %v3102_v61 = vpop.permute.xlu1 %417  ;;  %v3104_v62 = vpop.permute.xlu0 %415 }
 0x100   : > { %v3106_v63 = vpop.permute.xlu1 %421  ;;  %v3108_v1 = vpop.permute.xlu0 %419 }
 0x104   : > { %v441_v8 = vpop.permute.xlu1 %440  ;;  %v439_v9 = vpop.permute.xlu0 %438 }
 0x108   : > { %v445_v10 = vpop.permute.xlu1 %444  ;;  %v443_v11 = vpop.permute.xlu0 %442 }
 0x10c   : > { %v3110_v12 = vpop.permute.xlu1 %448  ;;  %v447_v13 = vpop.permute.xlu0 %446 }
 0x10d   : > { %v3204_v43 = vsel %vm454_vm5, %v445_v10, %v447_v13 }
 0x10e   : > { %4382 = vst [vmem:[#allocation36_spill] sm:$0xff] %v3204_v43 }
 0x110   : > { %v3112_v14 = vpop.permute.xlu1 %452  ;;  %v3114_v15 = vpop.permute.xlu0 %450 }
 0x111   : > { %v3439_v55 = vsel %vm454_vm5, %v3114_v15, %v3112_v14 }
 0x112   : > { %4399 = vst [vmem:[#allocation53_spill] sm:$0xff] %v3439_v55 }
 0x114   : > { %v472_v16 = vpop.permute.xlu1 %471  ;;  %v470_v17 = vpop.permute.xlu0 %469 }
 0x118   : > { %v476_v18 = vpop.permute.xlu1 %475  ;;  %v474_v19 = vpop.permute.xlu0 %473 }
 0x119   : > { %v3133_v33 = vsel %vm485_vm4, %v472_v16, %v474_v19 }
 0x11c   : > { %v3116_v20 = vpop.permute.xlu1 %479  ;;  %v478_v21 = vpop.permute.xlu0 %477 }
 0x120   : > { %v3118_v22 = vpop.permute.xlu1 %483  ;;  %v3120_v23 = vpop.permute.xlu0 %481 }
 0x124   : > { %v503_v26 = vpop.permute.xlu1 %502  ;;  %v501_v27 = vpop.permute.xlu0 %500 }
 0x125   : > { %v3136_v47 = vsel %vm516_vm3, %v501_v27, %v503_v26  ;;  %v3155_v27 = vsel %vm485_vm4, %v470_v17, %v472_v16  ;;  %v3180_v16 = vsel %vm485_vm4, %v478_v21, %v3116_v20  ;;  %v3191_v17 = vsel %vm423_vm6, %v3090_v56, %v412_v60 }
 0x126   : > { %4380 = vst [vmem:[#allocation34_spill] sm:$0xff] %v3180_v16 }
 0x128   : > { %v507_v31 = vpop.permute.xlu1 %506  ;;  %v505_v36 = vpop.permute.xlu0 %504 }
 0x129   : > { %v3123_v51 = vsel %vm516_vm3, %v505_v36, %v507_v31  ;;  %v3126_v32 = vsel %vm516_vm3, %v503_v26, %v505_v36  ;;  %v3143_v36 = vsel %vm485_vm4, %v474_v19, %v476_v18  ;;  %v3166_v19 = vsel %vm454_vm5, %v441_v8, %v443_v11 }
 0x12a   : > { %4374 = vst [vmem:[#allocation28_spill] sm:$0xff] %v3123_v51  ;;  %666 = vrot.lane.b32.xlu0 %v3123_v51, %s2660_s7  ;;  %664 = vrot.lane.b32.xlu1 %v3126_v32, %s2660_s7  ;;  %4375 = vst [vmem:[#allocation29_spill] sm:$0xff] %v3143_v36 }
 0x12c   : > { %v509_v48 = vpop.permute.xlu0 %508  ;;  %v3152_v26 = vpop.permute.xlu1 %510 }
 0x12d   : > { %v3146_v28 = vsel %vm516_vm3, %v507_v31, %v509_v48  ;;  %v3159_v29 = vsel %vm516_vm3, %v509_v48, %v3152_v26  ;;  %v3169_v31 = vsel %vm454_vm5, %v443_v11, %v445_v10  ;;  %v3176_v48 = vsel %vm485_vm4, %v476_v18, %v478_v21 }
 0x12e   : > { %648 = vrot.lane.b32.xlu0 %v3133_v33, %s2660_s7  ;;  %662 = vrot.lane.b32.xlu1 %v3136_v47, %s2660_s7  ;;  %4376 = vst [vmem:[#allocation30_spill] sm:$0xff] %v3146_v28  ;;  %4377 = vst [vmem:[#allocation31_spill] sm:$0xff] %v3159_v29  ;;  %v3187_v11 = vsel %vm454_vm5, %v439_v9, %v441_v8  ;;  %v3201_v21 = vsel %vm423_vm6, %v412_v60, %v3100_v59 }
 0x12f   : > { %4378 = vst [vmem:[#allocation32_spill] sm:$0xff] %v3169_v31  ;;  %4379 = vst [vmem:[#allocation33_spill] sm:$0xff] %v3176_v48  ;;  %v3213_v8 = vsel %vm423_vm6, %v3092_v57, %v3090_v56  ;;  %v3217_v9 = vsel %vm454_vm5, %v447_v13, %v3110_v12  ;;  %v3230_v56 = vsel %vm392_vm7, %v3038_v41, %v3054_v46 }
 0x130   : > { %v3197_v18 = vpop.permute.xlu0 %512  ;;  %4381 = vst [vmem:[#allocation35_spill] sm:$0xff] %v3201_v21  ;;  %4383 = vst [vmem:[#allocation37_spill] sm:$0xff] %v3217_v9  ;;  %v3219_v60 = vpop.permute.xlu1 %514  ;;  %v3235_v57 = vsel %vm392_vm7, %v3054_v46, %v3052_v45  ;;  %v3253_v46 = vsel %vm423_vm6, %v3104_v62, %v3102_v61  ;;  %v3280_v41 = vsel %vm392_vm7, %v3068_v50, %v3066_v49 }
 0x131   : > { %4384 = vst [vmem:[#allocation38_spill] sm:$0xff] %v3230_v56  ;;  %4385 = vst [vmem:[#allocation39_spill] sm:$0xff] %v3235_v57 }
 0x132   : > { %650 = vrot.lane.b32.xlu1 %v3143_v36, %s2660_s7  ;;  %668 = vrot.lane.b32.xlu0 %v3146_v28, %s2660_s7  ;;  %4387 = vst [vmem:[#allocation41_spill] sm:$0xff] %v3253_v46  ;;  %4390 = vst [vmem:[#allocation44_spill] sm:$0xff] %v3280_v41 }
 0x134   : > { %v3221_v44 = vpop.permute.xlu0 %534  ;;  %v3241_v10 = vpop.permute.xlu1 %536 }
 0x136   : > { %670 = vrot.lane.b32.xlu1 %v3159_v29, %s2660_s7  ;;  %646 = vrot.lane.b32.xlu0 %v3155_v27, %s2660_s7  ;;  %v4327_v29 = vmov 0.0  }
 0x137   : > { %873 = vmatprep.mubr.f32.mxu0 %v4327_v29  ;;  %944 = vmatprep.mubr.f32.mxu1 %v4327_v29  ;;  %v3357_v29 = vsel %vm516_vm3, %v3197_v18, %v3219_v60 }
 0x138   : > { %v3243_v13 = vpop.permute.xlu0 %538  ;;  %4394 = vst [vmem:[#allocation48_spill] sm:$0xff] %v3357_v29 }
 0x13a   : > { %632 = vrot.lane.b32.xlu1 %v3166_v19, %s2660_s7  ;;  %634 = vrot.lane.b32.xlu0 %v3169_v31, %s2660_s7 }
 0x13e   : > { %652 = vrot.lane.b32.xlu1 %v3176_v48, %s2660_s7  ;;  %654 = vrot.lane.b32.xlu0 %v3180_v16, %s2660_s7  ;;  %v3269_v16 = vpop.permute.xlu1 %540  ;;  %v3400_v48 = vsel %vm485_vm4, %v3116_v20, %v3120_v23 }
 0x13f   : > { %4397 = vst [vmem:[#allocation51_spill] sm:$0xff] %v3400_v48 }
 0x142   : > { %630 = vrot.lane.b32.xlu1 %v3187_v11, %s2660_s7  ;;  %616 = vrot.lane.b32.xlu0 %v3191_v17, %s2660_s7 }
 0x146   : > { %618 = vrot.lane.b32.xlu1 %v3201_v21, %s2660_s7  ;;  %636 = vrot.lane.b32.xlu0 %v3204_v43, %s2660_s7  ;;  %v3362_v43 = vsel %vm516_vm3, %v3152_v26, %v3197_v18 }
 0x147   : > { %4395 = vst [vmem:[#allocation49_spill] sm:$0xff] %v3362_v43 }
 0x14a   : > { %638 = vrot.lane.b32.xlu1 %v3217_v9, %s2660_s7  ;;  %614 = vrot.lane.b32.xlu0 %v3213_v8, %s2660_s7  ;;  %v3248_v9 = vsel %vm423_vm6, %v3100_v59, %v3104_v62  ;;  %v3267_v59 = vsel %vm392_vm7, %v3052_v45, %v3068_v50  ;;  %v3271_v62 = vpop.permute.xlu0 %542  ;;  %v3291_v45 = vpop.permute.xlu1 %544  ;;  %v3298_v50 = vsel %vm361_vm2, %v3016_v35, %v3014_v34 }
 0x14b   : > { %4386 = vst [vmem:[#allocation40_spill] sm:$0xff] %v3248_v9  ;;  %4389 = vst [vmem:[#allocation43_spill] sm:$0xff] %v3267_v59 }
 0x14c   : > { %4392 = vst [vmem:[#allocation46_spill] sm:$0xff] %v3298_v50 }
 0x14e   : > { %600 = vrot.lane.b32.xlu1 %v3230_v56, %s2660_s7  ;;  %602 = vrot.lane.b32.xlu0 %v3235_v57, %s2660_s7  ;;  %v3304_v30 = vpop.permute.xlu1 %548 }
 0x14f   : > { %4393 = vst [vmem:[#allocation47_spill] sm:$0xff] %v3304_v30 }
 0x152   : > { %620 = vrot.lane.b32.xlu1 %v3248_v9, %s2660_s7  ;;  %622 = vrot.lane.b32.xlu0 %v3253_v46, %s2660_s7  ;;  %v3293_v46 = vpop.permute.xlu0 %546  ;;  %v3316_v35 = vpop.permute.xlu1 %552 }
 0x156   : > { %598 = vrot.lane.b32.xlu1 %v3262_v58, %s2660_s7  ;;  %604 = vrot.lane.b32.xlu0 %v3267_v59, %s2660_s7 }
 0x15a   : > { %606 = vrot.lane.b32.xlu1 %v3280_v41, %s2660_s7  ;;  %588 = vrot.lane.b32.xlu0 %v3285_v42, %s2660_s7  ;;  %v3306_v41 = vpop.permute.xlu0 %550  ;;  %v3324_v42 = vpop.permute.xlu1 %556 }
 0x15e   : > { %590 = vrot.lane.b32.xlu1 %v3298_v50, %s2660_s7  ;;  %1557 = vrot.lane.b32.xlu0 %v2815_v0, %s2659_s6  ;;  %v3318_v50 = vpop.permute.xlu0 %554  ;;  %v3338_v59 = vpop.permute.xlu1 %560 }
 0x162   : > { %1559 = vrot.lane.b32.xlu1 %v2825_v2, %s2659_s6  ;;  %1561 = vrot.lane.b32.xlu0 %v2838_v5, %s2659_s6  ;;  %v3326_v57 = vpop.permute.xlu0 %558  ;;  %v3346_v9 = vpop.permute.xlu1 %564 }
 0x166   : > { %1555 = vrot.lane.b32.xlu1 %v2828_v3, %s2659_s6  ;;  %1534 = vrot.lane.b32.xlu0 %v2815_v0, %s2658_s23  ;;  %v3340_v21 = vpop.permute.xlu0 %562  ;;  %v3368_v25 = vpop.permute.xlu1 %568 }
 0x16a   : > { %1536 = vrot.lane.b32.xlu1 %v2825_v2, %s2658_s23  ;;  %1538 = vrot.lane.b32.xlu0 %v2838_v5, %s2658_s23  ;;  %v3348_v31 = vpop.permute.xlu0 %566  ;;  %v3376_v24 = vpop.permute.xlu1 %572 }
 0x16e   : > { %1563 = vrot.lane.b32.xlu1 %v2835_v4, %s2659_s6  ;;  %1565 = vrot.lane.b32.xlu0 %v2848_v7, %s2659_s6  ;;  %v3370_v36 = vpop.permute.xlu0 %570  ;;  %v3388_v18 = vpop.permute.xlu1 %576 }
 0x172   : > { %1532 = vrot.lane.b32.xlu1 %v2828_v3, %s2658_s23  ;;  %1511 = vrot.lane.b32.xlu0 %v2815_v0, %s2657_s5  ;;  %v3378_v26 = vpop.permute.xlu0 %574  ;;  %v3406_v39 = vpop.permute.xlu1 %580 }
 0x176   : > { %1513 = vrot.lane.b32.xlu1 %v2825_v2, %s2657_s5  ;;  %1515 = vrot.lane.b32.xlu0 %v2838_v5, %s2657_s5  ;;  %v3418_v20 = vpop.permute.xlu1 %584 }
 0x17a   : > { %1540 = vrot.lane.b32.xlu1 %v2835_v4, %s2658_s23  ;;  %1542 = vrot.lane.b32.xlu0 %v2848_v7, %s2658_s23 }
 0x17e   : > { %674 = vrot.lane.b32.xlu0 %v3357_v29, %s2660_s7  ;;  %672 = vrot.lane.b32.xlu1 %v3362_v43, %s2660_s7  ;;  %v3390_v29 = vpop.permute.xlu0 %578  ;;  %v3395_v43 = vsel %vm485_vm4, %v3120_v23, %v3118_v22 }
 0x17f   : > { %4396 = vst [vmem:[#allocation50_spill] sm:$0xff] %v3395_v43 }
 0x182   : > { %1488 = vrot.lane.b32.xlu0 %v2815_v0, %s2656_s29  ;;  %1509 = vrot.lane.b32.xlu1 %v2828_v3, %s2657_s5  ;;  %v3408_v51 = vpop.permute.xlu0 %582 }
 0x186   : > { %1492 = vrot.lane.b32.xlu0 %v2838_v5, %s2656_s29  ;;  %1490 = vrot.lane.b32.xlu1 %v2825_v2, %s2656_s29  ;;  %v3420_v23 = vpop.permute.xlu0 %586 }
 0x18a   : > { %1519 = vrot.lane.b32.xlu0 %v2848_v7, %s2657_s5  ;;  %1517 = vrot.lane.b32.xlu1 %v2835_v4, %s2657_s5 }
 0x18e   : > { %658 = vrot.lane.b32.xlu0 %v3395_v43, %s2660_s7  ;;  %656 = vrot.lane.b32.xlu1 %v3400_v48, %s2660_s7  ;;  %v3429_v48 = vsel %vm454_vm5, %v3110_v12, %v3114_v15 }
 0x18f   : > { %4398 = vst [vmem:[#allocation52_spill] sm:$0xff] %v3429_v48 }
 0x192   : > { %676 = vrot.lane.b32.xlu0 %v3219_v60, %s2660_s7  ;;  %1486 = vrot.lane.b32.xlu1 %v2828_v3, %s2656_s29 }
 0x196   : > { %1467 = vrot.lane.b32.xlu0 %v2825_v2, %s2655_s28  ;;  %1465 = vrot.lane.b32.xlu1 %v2815_v0, %s2655_s28 }
 0x19a   : > { %1494 = vrot.lane.b32.xlu0 %v2835_v4, %s2656_s29  ;;  %1469 = vrot.lane.b32.xlu1 %v2838_v5, %s2655_s28 }
 0x19c   : > { %v665_v60 = vpop.permute.xlu1 %664  ;;  %v667_v43 = vpop.permute.xlu0 %666 }
 0x19d   : > { %v736_v40 = vsel %vm678_vm8, %v665_v60, %v667_v43 }
 0x19e   : > { %640 = vrot.lane.b32.xlu0 %v3429_v48, %s2660_s7  ;;  %1496 = vrot.lane.b32.xlu1 %v2848_v7, %s2656_s29 }
 0x19f   : > { %823 = vmatprep.subr.mxu0 %v736_v40 }
 0x1a0   : > { %v663_v28 = vpop.permute.xlu1 %662  ;;  %v649_v54 = vpop.permute.xlu0 %648 }
 0x1a1   : > { %v735_v30 = vsel %vm678_vm8, %v663_v28, %v665_v60 }
 0x1a2   : > { %1463 = vrot.lane.b32.xlu0 %v2828_v3, %s2655_s28  ;;  %642 = vrot.lane.b32.xlu1 %v3439_v55, %s2660_s7 }
 0x1a3   : > { %824 = vmatpush1.msra.mxu0 %v735_v30 }
 0x1a4   : > { %v651_v12 = vpop.permute.xlu1 %650  ;;  %v669_v48 = vpop.permute.xlu0 %668 }
 0x1a5   : > { %v729_v40 = vsel %vm678_vm8, %v649_v54, %v651_v12  ;;  %v737_v30 = vsel %vm678_vm8, %v667_v43, %v669_v48  ;;  %v3476_v43 = vsel %vm423_vm6, %v3102_v61, %v3108_v1 }
 0x1a6   : > { %1442 = vrot.lane.b32.xlu0 %v2815_v0, %s2654_s26  ;;  %660 = vrot.lane.b32.xlu1 %v3118_v22, %s2660_s7 }
 0x1a7   : > { %825 = vmatprep.subr.mxu0 %v729_v40 }
 0x1a8   : > { %v3451_v15 = vpop.permute.xlu1 %670  ;;  %v647_v28 = vpop.permute.xlu0 %646 }
 0x1a9   : > { %v728_v60 = vsel %vm678_vm8, %v647_v28, %v649_v54  ;;  %v738_v55 = vsel %vm678_vm8, %v669_v48, %v3451_v15 }
 0x1aa   : > { %1446 = vrot.lane.b32.xlu0 %v2838_v5, %s2654_s26  ;;  %1444 = vrot.lane.b32.xlu1 %v2825_v2, %s2654_s26 }
 0x1ab   : > { %826 = vmatpush1.msra.mxu0 %v728_v60  ;;  %894 = vmatprep.subr.mxu1 %v738_v55  ;;  %v3471_v55 = vsel %vm423_vm6, %v3108_v1, %v3106_v63 }
 0x1ac   : > { %895 = vmatpush1.msra.mxu1 %v737_v30  ;;  %v633_v22 = vpop.permute.xlu1 %632  ;;  %v635_v40 = vpop.permute.xlu0 %634 }
 0x1ad   : > { %v722_v58 = vsel %vm678_vm8, %v633_v22, %v635_v40 }
 0x1ae   : > { %1473 = vrot.lane.b32.xlu0 %v2848_v7, %s2655_s28  ;;  %1471 = vrot.lane.b32.xlu1 %v2835_v4, %s2655_s28 }
 0x1af   : > { %827 = vmatprep.subr.mxu0 %v722_v58 }
 0x1b0   : > { %v653_v54 = vpop.permute.xlu1 %652  ;;  %v3466_v28 = vpop.permute.xlu0 %654 }
 0x1b1   : > { %v731_v48 = vsel %vm678_vm8, %v653_v54, %v3466_v28  ;;  %v730_v60 = vsel %vm678_vm8, %v651_v12, %v653_v54 }
 0x1b2   : > { %626 = vrot.lane.b32.xlu0 %v3471_v55, %s2660_s7  ;;  %624 = vrot.lane.b32.xlu1 %v3476_v43, %s2660_s7 }
 0x1b3   : > { %896 = vmatprep.subr.mxu1 %v731_v48 }
 0x1b4   : > { %897 = vmatpush1.msra.mxu1 %v730_v60  ;;  %v631_v58 = vpop.permute.xlu1 %630  ;;  %v617_v30 = vpop.permute.xlu0 %616 }
 0x1b5   : > { %v721_v56 = vsel %vm678_vm8, %v631_v58, %v633_v22 }
 0x1b6   : > { %1440 = vrot.lane.b32.xlu1 %v2828_v3, %s2654_s26  ;;  %644 = vrot.lane.b32.xlu0 %v3112_v14, %s2660_s7 }
 0x1b7   : > { %828 = vmatpush1.msra.mxu0 %v721_v56 }
 0x1b8   : > { %v619_v61 = vpop.permute.xlu1 %618  ;;  %v637_v1 = vpop.permute.xlu0 %636 }
 0x1b9   : > { %v715_v12 = vsel %vm678_vm8, %v617_v30, %v619_v61  ;;  %v723_v56 = vsel %vm678_vm8, %v635_v40, %v637_v1  ;;  %v3520_v40 = vsel %vm392_vm7, %v3078_v53, %v3076_v52 }
 0x1ba   : > { %1419 = vrot.lane.b32.xlu1 %v2815_v0, %s2653_s22  ;;  %1421 = vrot.lane.b32.xlu0 %v2825_v2, %s2653_s22 }
 0x1bb   : > { %829 = vmatprep.subr.mxu0 %v715_v12 }
 0x1bc   : > { %v3495_v54 = vpop.permute.xlu1 %638  ;;  %v615_v22 = vpop.permute.xlu0 %614 }
 0x1bd   : > { %v714_v48 = vsel %vm678_vm8, %v615_v22, %v617_v30  ;;  %v724_v14 = vsel %vm678_vm8, %v637_v1, %v3495_v54  ;;  %v3508_v30 = vsel %vm392_vm7, %v3066_v49, %v3078_v53  ;;  %v701_v53 = vsel %vm678_vm8, %v3418_v20, %v3420_v23 }
 0x1be   : > { %1423 = vrot.lane.b32.xlu1 %v2838_v5, %s2653_s22  ;;  %1448 = vrot.lane.b32.xlu0 %v2835_v4, %s2654_s26 }
 0x1bf   : > { %830 = vmatpush1.msra.mxu0 %v714_v48  ;;  %898 = vmatprep.subr.mxu1 %v724_v14 }
 0x1c0   : > { %899 = vmatpush1.msra.mxu1 %v723_v56  ;;  %v601_v60 = vpop.permute.xlu1 %600  ;;  %v603_v58 = vpop.permute.xlu0 %602 }
 0x1c1   : > { %v708_v12 = vsel %vm678_vm8, %v601_v60, %v603_v58 }
 0x1c2   : > { %1450 = vrot.lane.b32.xlu1 %v2848_v7, %s2654_s26  ;;  %608 = vrot.lane.b32.xlu0 %v3508_v30, %s2660_s7 }
 0x1c3   : > { %831 = vmatprep.subr.mxu0 %v708_v12 }
 0x1c4   : > { %v621_v22 = vpop.permute.xlu1 %620  ;;  %v3515_v48 = vpop.permute.xlu0 %622 }
 0x1c5   : > { %v717_v49 = vsel %vm678_vm8, %v621_v22, %v3515_v48  ;;  %v716_v1 = vsel %vm678_vm8, %v619_v61, %v621_v22  ;;  %v700_v22 = vsel %vm678_vm8, %v3408_v51, %v3418_v20  ;;  %v687_v51 = vsel %vm678_vm8, %v3316_v35, %v3318_v50 }
 0x1c6   : > { %610 = vrot.lane.b32.xlu1 %v3520_v40, %s2660_s7  ;;  %1417 = vrot.lane.b32.xlu0 %v2828_v3, %s2653_s22 }
 0x1c7   : > { %900 = vmatprep.subr.mxu1 %v717_v49 }
 0x1c8   : > { %901 = vmatpush1.msra.mxu1 %v716_v1  ;;  %v599_v14 = vpop.permute.xlu1 %598  ;;  %v605_v56 = vpop.permute.xlu0 %604 }
 0x1c9   : > { %v707_v12 = vsel %vm678_vm8, %v599_v14, %v601_v60  ;;  %v693_v60 = vsel %vm678_vm8, %v3348_v31, %v3368_v25  ;;  %v709_v20 = vsel %vm678_vm8, %v603_v58, %v605_v56  ;;  %v3570_v31 = vld [vmem:[#allocation5 + $0x8] sm:$0xff] }
 0x1ca   : > { %628 = vrot.lane.b32.xlu1 %v3106_v63, %s2660_s7  ;;  %1396 = vrot.lane.b32.xlu0 %v2815_v0, %s2652_s24  ;;  %v694_v63 = vsel %vm678_vm8, %v3368_v25, %v3370_v36 }
 0x1cb   : > { %832 = vmatpush1.msra.mxu0 %v707_v12  ;;  %v4400_v12 = vmov 0.0  }
 0x1cc   : > { %833 = vmatprep.subr.mxu0 %v701_v53  ;;  %v3537_v61 = vpop.permute.xlu1 %606  ;;  %v589_v49 = vpop.permute.xlu0 %588  ;;  %v3604_v53 = vsel %vm361_vm2, %v3026_v38, %v3024_v37 }
 0x1cd   : > { %834 = vmatpush1.msra.mxu0 %v700_v22  ;;  %v710_v0 = vsel %vm678_vm8, %v605_v56, %v3537_v61 }
 0x1ce   : > { %835 = vmatprep.subr.mxu0 %v694_v63  ;;  %1398 = vrot.lane.b32.xlu1 %v2825_v2, %s2652_s24  ;;  %v686_v2 = vsel %vm678_vm8, %v3306_v41, %v3316_v35  ;;  %v679_v41 = vsel %vm678_vm8, %v3221_v44, %v3241_v10  ;;  %v702_v35 = vsel %vm678_vm8, %v3420_v23, %v589_v49 }
 0x1cf   : > { %1400 = vrot.lane.b32.xlu0 %v2838_v5, %s2652_s24  ;;  %836 = vmatpush1.msra.mxu0 %v693_v60  ;;  %v680_v5 = vsel %vm678_vm8, %v3241_v10, %v3243_v13  ;;  %v696_v44 = vsel %vm678_vm8, %v3376_v24, %v3378_v26  ;;  %v3593_v10 = vsel %vm361_vm2, %v3014_v34, %v3026_v38 }
 0x1d0   : > { %902 = vmatprep.subr.mxu1 %v710_v0  ;;  %837 = vmatprep.subr.mxu0 %v687_v51  ;;  %v3558_v1 = vpop.permute.xlu1 %590  ;;  %v3563_v14 = vpop.permute.xlu0 %1557  ;;  %v695_v23 = vsel %vm678_vm8, %v3370_v36, %v3376_v24  ;;  %v689_v34 = vsel %vm678_vm8, %v3324_v42, %v3326_v57  ;;  %v688_v24 = vsel %vm678_vm8, %v3318_v50, %v3324_v42 }
 0x1d1   : > { %903 = vmatpush1.msra.mxu1 %v709_v20  ;;  %838 = vmatpush1.msra.mxu0 %v686_v2  ;;  %v703_v25 = vsel %vm678_vm8, %v589_v49, %v3558_v1  ;;  %v682_v38 = vsel %vm678_vm8, %v3269_v16, %v3271_v62  ;;  %v681_v49 = vsel %vm678_vm8, %v3243_v13, %v3269_v16 }
 0x1d2   : > { %839 = vmatprep.subr.mxu0 %v680_v5  ;;  %1425 = vrot.lane.b32.xlu1 %v2835_v4, %s2653_s22 }
 0x1d3   : > { %1427 = vrot.lane.b32.xlu0 %v2848_v7, %s2653_s22  ;;  %840 = vmatpush1.msra.mxu0 %v679_v41 }
 0x1d4   : > { %904 = vmatprep.subr.mxu1 %v703_v25  ;;  %v3581_v58 = vpop.permute.xlu1 %1559  ;;  %v3583_v56 = vpop.permute.xlu0 %1561  ;;  %2298 = vmatmul.mubr.msk.f32.vlgmr.msra.gmra.mxu0 %vm805_vm9, %v3570_v31 }
 0x1d5   : > { %905 = vmatpush1.msra.mxu1 %v702_v35  ;;  %1015 = vmatprep.mubr.f32.mxu0 %v4400_v12 }
 0x1d6   : > { %906 = vmatprep.subr.mxu1 %v696_v44  ;;  %592 = vrot.lane.b32.xlu1 %v3593_v10, %s2660_s7 }
 0x1d7   : > { %907 = vmatpush1.msra.mxu1 %v695_v23  ;;  %594 = vrot.lane.b32.xlu0 %v3604_v53, %s2660_s7 }
 0x1d8   : > { %908 = vmatprep.subr.mxu1 %v689_v34  ;;  %v3614_v36 = vpop.permute.xlu1 %1555  ;;  %v3616_v22 = vpop.permute.xlu0 %1534 }
 0x1d9   : > { %909 = vmatpush1.msra.mxu1 %v688_v24 }
 0x1da   : > { %910 = vmatprep.subr.mxu1 %v682_v38  ;;  %1394 = vrot.lane.b32.xlu1 %v2828_v3, %s2652_s24 }
 0x1db   : > { %911 = vmatpush1.msra.mxu1 %v681_v49  ;;  %612 = vrot.lane.b32.xlu0 %v3076_v52, %s2660_s7  ;;  %v3650_v52 = vld [vmem:[%s2804_s27 + $0x40] sm:$0xff]  ;;  %v1572_v49 = vsel %vm516_vm3, %v3563_v14, %v3581_v58 }
 0x1dc   : > { %v3628_v42 = vpop.permute.xlu1 %1536  ;;  %v3630_v50 = vpop.permute.xlu0 %1538  ;;  %2343 = vmatprep.subr.mxu1 %v4400_v12  ;;  %2299 = vmatmul.mubr.msk.f32.vlgmr.msra.gmra.mxu1 %vm805_vm9, %v3570_v31 }
 0x1dd   : > { %2361 = vmatprep.mubr.msk.f32.mxu1 %vm2662_vm10, %v4400_v12 }
 0x1de   : > { %1402 = vrot.lane.b32.xlu1 %v2835_v4, %s2652_s24 }
 0x1df   : > { %1404 = vrot.lane.b32.xlu0 %v2848_v7, %s2652_s24 }
 0x1e0   : > { %v3639_v3 = vpop.permute.xlu1 %1563  ;;  %v3641_v16 = vpop.permute.xlu0 %1565 }
 0x1e2   : > { %596 = vrot.lane.b32.xlu1 %v3024_v37, %s2660_s7 }
 0x1e3   : > { %1567 = vrot.lane.b32.xlu0 %v2845_v6, %s2659_s6 }
 0x1e4   : > { %v3652_v4 = vpop.permute.xlu1 %1532  ;;  %v3654_v13 = vpop.permute.xlu0 %1511 }
 0x1e6   : > { %1569 = vrot.lane.b32.xlu1 %v3650_v52, %s2659_s6 }
 0x1e7   : > { %1544 = vrot.lane.b32.xlu0 %v2845_v6, %s2658_s23 }
 0x1e8   : > { %v3660_v7 = vpop.permute.xlu1 %1513  ;;  %v3662_v63 = vpop.permute.xlu0 %1515 }
 0x1ea   : > { %1546 = vrot.lane.b32.xlu1 %v3650_v52, %s2658_s23 }
 0x1eb   : > { %1521 = vrot.lane.b32.xlu0 %v2845_v6, %s2657_s5 }
 0x1ec   : > { %v3668_v37 = vpop.permute.xlu1 %1540  ;;  %v3670_v0 = vpop.permute.xlu0 %1542 }
 0x1ee   : > { %1523 = vrot.lane.b32.xlu1 %v3650_v52, %s2657_s5 }
 0x1ef   : > { %1498 = vrot.lane.b32.xlu0 %v2845_v6, %s2656_s29 }
 0x1f0   : > { %v673_v60 = vpop.permute.xlu1 %672  ;;  %v675_v51 = vpop.permute.xlu0 %674 }
 0x1f1   : > { %v740_v20 = vsel %vm678_vm8, %v673_v60, %v675_v51  ;;  %v739_v2 = vsel %vm678_vm8, %v3451_v15, %v673_v60 }
 0x1f2   : > { %1500 = vrot.lane.b32.xlu1 %v3650_v52, %s2656_s29  ;;  %965 = vmatprep.subr.mxu0 %v740_v20  ;;  %s2665_s29 = smov [#allocation7]  }
 0x1f3   : > { %1475 = vrot.lane.b32.xlu0 %v2845_v6, %s2655_s28  ;;  %966 = vmatpush1.msra.mxu0 %v739_v2  ;;  %v1571_v2 = vsel %vm516_vm3, %v3614_v36, %v3563_v14  ;;  %v1550_v14 = vsel %vm485_vm4, %v3628_v42, %v3630_v50  ;;  %s2566_s5 = sshll.u32 %s2665_s29, 4  ;;  %s2567_s5 = int_to_ptr.vmem [resolvable:$false] %s2566_s5 }
 0x1f4   : > { %v3683_v5 = vpop.permute.xlu1 %1509  ;;  %v3685_v25 = vpop.permute.xlu0 %1488  ;;  %s2568_s23 = scalar_lea.vmem %s2567_s5, 1792 }
 0x1f6   : > { %1477 = vrot.lane.b32.xlu1 %v3650_v52, %s2655_s28  ;;  %s2165_s28 = scalar_lea.sflag [#allocation4], %s2800_s13 }
 0x1f7   : > { %1452 = vrot.lane.b32.xlu0 %v2845_v6, %s2654_s26 }
 0x1f8   : > { %v3691_v41 = vpop.permute.xlu1 %1490  ;;  %v3693_v15 = vpop.permute.xlu0 %1492 }
 0x1fa   : > { %1454 = vrot.lane.b32.xlu1 %v3650_v52, %s2654_s26  ;;  %s4256_s26 = scalar_lea.hbm %s4302_s4, %s2410_s21 }
 0x1fb   : > { %1429 = vrot.lane.b32.xlu0 %v2845_v6, %s2653_s22 }
 0x1fc   : > { %v3699_v35 = vpop.permute.xlu1 %1517  ;;  %v3701_v44 = vpop.permute.xlu0 %1519 }
 0x1fe   : > { %1431 = vrot.lane.b32.xlu1 %v3650_v52, %s2653_s22 }
 0x1ff   : > { %1406 = vrot.lane.b32.xlu0 %v2845_v6, %s2652_s24 }
 0x200   : > { %v657_v23 = vpop.permute.xlu1 %656  ;;  %v659_v34 = vpop.permute.xlu0 %658 }
 0x201   : > { %v733_v24 = vsel %vm678_vm8, %v657_v23, %v659_v34  ;;  %v732_v38 = vsel %vm678_vm8, %v3466_v28, %v657_v23  ;;  %v1573_v28 = vsel %vm516_vm3, %v3581_v58, %v3583_v56 }
 0x202   : > { %1408 = vrot.lane.b32.xlu1 %v3650_v52, %s2652_s24  ;;  %967 = vmatprep.subr.mxu0 %v733_v24 }
 0x203   : > { %1710 = vrot.lane.b32.xlu0 %v1572_v49, %s2663_s8  ;;  %968 = vmatpush1.msra.mxu0 %v732_v38  ;;  %v1574_v38 = vsel %vm516_vm3, %v3583_v56, %v3639_v3  ;;  %v1575_v49 = vsel %vm516_vm3, %v3639_v3, %v3641_v16  ;;  %v1526_v56 = vsel %vm454_vm5, %v3654_v13, %v3660_v7 }
 0x204   : > { %v1487_v6 = vpop.permute.xlu1 %1486  ;;  %v677_v60 = vpop.permute.xlu0 %676  ;;  %v1527_v3 = vsel %vm454_vm5, %v3660_v7, %v3662_v63  ;;  %v1552_v7 = vsel %vm485_vm4, %v3668_v37, %v3670_v0 }
 0x205   : > { %v741_v20 = vsel %vm678_vm8, %v675_v51, %v677_v60  ;;  %v1549_v51 = vsel %vm485_vm4, %v3616_v22, %v3628_v42 }
 0x206   : > { %1712 = vrot.lane.b32.xlu1 %v1573_v28, %s2663_s8  ;;  %2344 = vmatpush3.msra.mxu1 %v741_v20  ;;  %v1548_v20 = vsel %vm485_vm4, %v3652_v4, %v3616_v22  ;;  %v1551_v22 = vsel %vm485_vm4, %v3630_v50, %v3668_v37  ;;  %v1525_v50 = vsel %vm454_vm5, %v3683_v5, %v3654_v13 }
 0x207   : > { %1708 = vrot.lane.b32.xlu0 %v1571_v2, %s2663_s8  ;;  %2345 = vmatprep.subr.mxu1 %v4400_v12  ;;  %v1504_v13 = vsel %vm423_vm6, %v3691_v41, %v3693_v15 }
 0x208   : > { %v3726_v23 = vpop.permute.xlu1 %1465  ;;  %v1468_v24 = vpop.permute.xlu0 %1467 }
 0x20a   : > { %1694 = vrot.lane.b32.xlu1 %v1549_v51, %s2663_s8 }
 0x20b   : > { %1696 = vrot.lane.b32.xlu0 %v1550_v14, %s2663_s8 }
 0x20c   : > { %v3736_v58 = vpop.permute.xlu1 %1469  ;;  %v3738_v36 = vpop.permute.xlu0 %1494 }
 0x20e   : > { %1714 = vrot.lane.b32.xlu1 %v1574_v38, %s2663_s8 }
 0x20f   : > { %1716 = vrot.lane.b32.xlu0 %v1575_v49, %s2663_s8 }
 0x210   : > { %v3748_v60 = vpop.permute.xlu1 %1496  ;;  %v641_v42 = vpop.permute.xlu0 %640 }
 0x211   : > { %v725_v4 = vsel %vm678_vm8, %v3495_v54, %v641_v42 }
 0x212   : > { %1692 = vrot.lane.b32.xlu1 %v1548_v20, %s2663_s8  ;;  %v1528_v20 = vsel %vm454_vm5, %v3662_v63, %v3699_v35  ;;  %v1480_v63 = vsel %vm392_vm7, %v3726_v23, %v1468_v24 }
 0x213   : > { %1678 = vrot.lane.b32.xlu0 %v1526_v56, %s2663_s8  ;;  %v1529_v56 = vsel %vm454_vm5, %v3699_v35, %v3701_v44 }
 0x214   : > { %v643_v28 = vpop.permute.xlu1 %642  ;;  %v1464_v2 = vpop.permute.xlu0 %1463 }
 0x215   : > { %v726_v51 = vsel %vm678_vm8, %v641_v42, %v643_v28 }
 0x216   : > { %1680 = vrot.lane.b32.xlu1 %v1527_v3, %s2663_s8  ;;  %969 = vmatprep.subr.mxu0 %v726_v51 }
 0x217   : > { %1698 = vrot.lane.b32.xlu0 %v1551_v22, %s2663_s8  ;;  %970 = vmatpush1.msra.mxu0 %v725_v4 }
 0x218   : > { %v661_v14 = vpop.permute.xlu1 %660  ;;  %v1443_v38 = vpop.permute.xlu0 %1442 }
 0x219   : > { %v734_v49 = vsel %vm678_vm8, %v659_v34, %v661_v14  ;;  %v1503_v34 = vsel %vm423_vm6, %v3685_v25, %v3691_v41  ;;  %v1502_v41 = vsel %vm423_vm6, %v1487_v6, %v3685_v25  ;;  %v1481_v25 = vsel %vm392_vm7, %v1468_v24, %v3736_v58 }
 0x21a   : > { %1700 = vrot.lane.b32.xlu1 %v1552_v7, %s2663_s8  ;;  %2346 = vmatpush3.msra.mxu1 %v734_v49  ;;  %v1479_v24 = vsel %vm392_vm7, %v1464_v2, %v3726_v23 }
 0x21b   : > { %1676 = vrot.lane.b32.xlu0 %v1525_v50, %s2663_s8  ;;  %2347 = vmatprep.subr.mxu1 %v4400_v12 }
 0x21c   : > { %v1445_v54 = vpop.permute.xlu1 %1444  ;;  %v3779_v42 = vpop.permute.xlu0 %1446 }
 0x21e   : > { %1662 = vrot.lane.b32.xlu1 %v1503_v34, %s2663_s8  ;;  %v1457_v34 = vsel %vm361_vm2, %v1443_v38, %v1445_v54 }
 0x21f   : > { %1664 = vrot.lane.b32.xlu0 %v1504_v13, %s2663_s8  ;;  %v1458_v13 = vsel %vm361_vm2, %v1445_v54, %v3779_v42 }
 0x220   : > { %v1472_v37 = vpop.permute.xlu1 %1471  ;;  %v3789_v5 = vpop.permute.xlu0 %1473 }
 0x221   : > { %v1482_v23 = vsel %vm392_vm7, %v3736_v58, %v1472_v37  ;;  %v1483_v2 = vsel %vm392_vm7, %v1472_v37, %v3789_v5 }
 0x222   : > { %1682 = vrot.lane.b32.xlu1 %v1528_v20, %s2663_s8 }
 0x223   : > { %1684 = vrot.lane.b32.xlu0 %v1529_v56, %s2663_s8 }
 0x224   : > { %v625_v3 = vpop.permute.xlu1 %624  ;;  %v627_v51 = vpop.permute.xlu0 %626 }
 0x225   : > { %v719_v22 = vsel %vm678_vm8, %v625_v3, %v627_v51  ;;  %v718_v4 = vsel %vm678_vm8, %v3515_v48, %v625_v3  ;;  %v1505_v48 = vsel %vm423_vm6, %v3693_v15, %v3738_v36 }
 0x226   : > { %1660 = vrot.lane.b32.xlu1 %v1502_v41, %s2663_s8  ;;  %971 = vmatprep.subr.mxu0 %v719_v22 }
 0x227   : > { %1646 = vrot.lane.b32.xlu0 %v1480_v63, %s2663_s8  ;;  %972 = vmatpush1.msra.mxu0 %v718_v4 }
 0x228   : > { %v1441_v35 = vpop.permute.xlu1 %1440  ;;  %v645_v14 = vpop.permute.xlu0 %644 }
 0x229   : > { %v727_v49 = vsel %vm678_vm8, %v643_v28, %v645_v14  ;;  %v1506_v28 = vsel %vm423_vm6, %v3738_v36, %v3748_v60  ;;  %v1456_v41 = vsel %vm361_vm2, %v1441_v35, %v1443_v38 }
 0x22a   : > { %1648 = vrot.lane.b32.xlu1 %v1481_v25, %s2663_s8  ;;  %2348 = vmatpush3.msra.mxu1 %v727_v49 }
 0x22b   : > { %1666 = vrot.lane.b32.xlu0 %v1505_v48, %s2663_s8  ;;  %2349 = vmatprep.subr.mxu1 %v4400_v12 }
 0x22c   : > { %v1420_v6 = vpop.permute.xlu1 %1419  ;;  %v1422_v7 = vpop.permute.xlu0 %1421 }
 0x22d   : > { %v1434_v22 = vsel %vm330_vm1, %v1420_v6, %v1422_v7 }
 0x22e   : > { %1668 = vrot.lane.b32.xlu1 %v1506_v28, %s2663_s8 }
 0x22f   : > { %1644 = vrot.lane.b32.xlu0 %v1479_v24, %s2663_s8 }
 0x230   : > { %v1424_v50 = vpop.permute.xlu1 %1423  ;;  %v1449_v15 = vpop.permute.xlu0 %1448 }
 0x231   : > { %v1435_v14 = vsel %vm330_vm1, %v1422_v7, %v1424_v50  ;;  %v1459_v38 = vsel %vm361_vm2, %v3779_v42, %v1449_v15 }
 0x232   : > { %1630 = vrot.lane.b32.xlu1 %v1457_v34, %s2663_s8 }
 0x233   : > { %1632 = vrot.lane.b32.xlu0 %v1458_v13, %s2663_s8 }
 0x234   : > { %v3829_v20 = vpop.permute.xlu1 %1450  ;;  %v609_v36 = vpop.permute.xlu0 %608 }
 0x235   : > { %v711_v58 = vsel %vm678_vm8, %v3537_v61, %v609_v36  ;;  %v1460_v49 = vsel %vm361_vm2, %v1449_v15, %v3829_v20 }
 0x236   : > { %1650 = vrot.lane.b32.xlu1 %v1482_v23, %s2663_s8 }
 0x237   : > { %1652 = vrot.lane.b32.xlu0 %v1483_v2, %s2663_s8  ;;  %v697_v2 = vsel %vm678_vm8, %v3378_v26, %v3388_v18  ;;  %v690_v26 = vsel %vm678_vm8, %v3326_v57, %v3338_v59  ;;  %v3901_v57 = vld [vmem:[%s2804_s27 + $0x18] sm:$0xff] }
 0x238   : > { %v611_v56 = vpop.permute.xlu1 %610  ;;  %v1418_v3 = vpop.permute.xlu0 %1417 }
 0x239   : > { %v712_v54 = vsel %vm678_vm8, %v609_v36, %v611_v56  ;;  %v1433_v25 = vsel %vm330_vm1, %v1418_v3, %v1420_v6 }
 0x23a   : > { %1628 = vrot.lane.b32.xlu1 %v1456_v41, %s2663_s8  ;;  %973 = vmatprep.subr.mxu0 %v712_v54  ;;  %v691_v41 = vsel %vm678_vm8, %v3338_v59, %v3340_v21  ;;  %v3883_v54 = vld [vmem:[%s2804_s27 + $0x10] sm:$0xff] }
 0x23b   : > { %1614 = vrot.lane.b32.xlu0 %v1434_v22, %s2663_s8  ;;  %974 = vmatpush1.msra.mxu0 %v711_v58 }
 0x23c   : > { %v629_v37 = vpop.permute.xlu1 %628  ;;  %v1397_v4 = vpop.permute.xlu0 %1396 }
 0x23d   : > { %v720_v63 = vsel %vm678_vm8, %v627_v51, %v629_v37  ;;  %v683_v37 = vsel %vm678_vm8, %v3271_v62, %v3291_v45 }
 0x23e   : > { %2350 = vmatpush3.msra.mxu1 %v720_v63  ;;  %1616 = vrot.lane.b32.xlu1 %v1435_v14, %s2663_s8  ;;  %v4404_v14 = vld [vmem:[#allocation26_spill] sm:$0xff] }
 0x23f   : > { %1634 = vrot.lane.b32.xlu0 %v1459_v38, %s2663_s8  ;;  %2351 = vmatprep.subr.mxu1 %v4400_v12  ;;  %v4405_v38 = vld [vmem:[#allocation25_spill] sm:$0xff] }
 0x240   : > { %v1399_v61 = vpop.permute.xlu1 %1398 }
 0x241   : > { %v1401_v35 = vpop.permute.xlu0 %1400  ;;  %v1411_v42 = vsel %vm299_vm0, %v1397_v4, %v1399_v61 }
 0x242   : > { %1636 = vrot.lane.b32.xlu1 %v1460_v49, %s2663_s8  ;;  %v1412_v7 = vsel %vm299_vm0, %v1399_v61, %v1401_v35  ;;  %v4406_v61 = vld [vmem:[#allocation30_spill] sm:$0xff] }
 0x243   : > { %1612 = vrot.lane.b32.xlu0 %v1433_v25, %s2663_s8  ;;  %v4407_v25 = vld [vmem:[#allocation19_spill] sm:$0xff] }
 0x244   : > { %v1426_v51 = vpop.permute.xlu1 %1425 }
 0x245   : > { %v3856_v48 = vpop.permute.xlu0 %1427  ;;  %v1436_v24 = vsel %vm330_vm1, %v1424_v50, %v1426_v51  ;;  %v698_v50 = vsel %vm678_vm8, %v3388_v18, %v3390_v29 }
 0x246   : > { %1598 = vrot.lane.b32.xlu1 %v1411_v42, %s2663_s8  ;;  %v1437_v34 = vsel %vm330_vm1, %v1426_v51, %v3856_v48  ;;  %v4408_v42 = vld [vmem:[#allocation28_spill] sm:$0xff] }
 0x247   : > { %1600 = vrot.lane.b32.xlu0 %v1412_v7, %s2663_s8  ;;  %v4409_v7 = vld [vmem:[#allocation18_spill] sm:$0xff] }
 0x248   : > { %v593_v28 = vpop.permute.xlu1 %592 }
 0x249   : > { %v704_v6 = vsel %vm678_vm8, %v3558_v1, %v593_v28  ;;  %v595_v15 = vpop.permute.xlu0 %594 }
 0x24a   : > { %1618 = vrot.lane.b32.xlu1 %v1436_v24, %s2663_s8  ;;  %v705_v13 = vsel %vm678_vm8, %v593_v28, %v595_v15  ;;  %v4410_v28 = vld [vmem:[#allocation33_spill] sm:$0xff]  ;;  %v4411_v24 = vld [vmem:[#allocation11_spill] sm:$0xff] }
 0x24b   : > { %1620 = vrot.lane.b32.xlu0 %v1437_v34, %s2663_s8  ;;  %975 = vmatprep.subr.mxu0 %v705_v13  ;;  %v4414_v13 = vld [vmem:[#allocation36_spill] sm:$0xff] }
 0x24c   : > { %976 = vmatpush1.msra.mxu0 %v704_v6  ;;  %v1395_v36 = vpop.permute.xlu1 %1394  ;;  %v4412_v6 = vld [vmem:[#allocation29_spill] sm:$0xff] }
 0x24d   : > { %v1410_v1 = vsel %vm299_vm0, %v1395_v36, %v1397_v4  ;;  %977 = vmatprep.subr.mxu0 %v698_v50  ;;  %v613_v23 = vpop.permute.xlu0 %612  ;;  %v4415_v50 = vld [vmem:[#allocation32_spill] sm:$0xff] }
 0x24e   : > { %v713_v3 = vsel %vm678_vm8, %v611_v56, %v613_v23  ;;  %978 = vmatpush1.msra.mxu0 %v697_v2  ;;  %1596 = vrot.lane.b32.xlu1 %v1410_v1, %s2663_s8  ;;  %v684_v56 = vsel %vm678_vm8, %v3291_v45, %v3293_v46  ;;  %v3979_v1 = vld [vmem:[#allocation5] sm:$0xff]  ;;  %v2505_v23 = vld [vmem:[%s2804_s27] sm:$0xff] }
 0x24f   : > { %1582 = vrot.lane.b32.xlu0 %v3883_v54, %s2663_s8  ;;  %979 = vmatprep.subr.mxu0 %v691_v41  ;;  %v4417_v41 = vld [vmem:[#allocation49_spill] sm:$0xff] }
 0x250   : > { %2352 = vmatpush3.msra.mxu1 %v713_v3  ;;  %980 = vmatpush1.msra.mxu0 %v690_v26  ;;  %v1403_v18 = vpop.permute.xlu1 %1402  ;;  %v4416_v3 = vld [vmem:[#allocation40_spill] sm:$0xff] }
 0x251   : > { %v1413_v22 = vsel %vm299_vm0, %v1401_v35, %v1403_v18  ;;  %981 = vmatprep.subr.mxu0 %v684_v56  ;;  %v3894_v58 = vpop.permute.xlu0 %1404  ;;  %2353 = vmatprep.subr.mxu1 %v4400_v12  ;;  %v4420_v56 = vld [vmem:[#allocation31_spill] sm:$0xff] }
 0x252   : > { %982 = vmatpush1.msra.mxu0 %v683_v37  ;;  %1584 = vrot.lane.b32.xlu1 %v3901_v57, %s2663_s8  ;;  %v1414_v4 = vsel %vm299_vm0, %v1403_v18, %v3894_v58  ;;  %v4418_v18 = vld [vmem:[#allocation35_spill] sm:$0xff] }
 0x253   : > { %1602 = vrot.lane.b32.xlu0 %v1413_v22, %s2663_s8  ;;  %1109 = vmatprep.subr.mxu0 %v3126_v32  ;;  %v2502_v32 = vld [vmem:[%s2804_s27 + $0x8] sm:$0xff]  ;;  %v4421_v37 = vld [vmem:[#allocation39_spill] sm:$0xff] }
 0x254   : > { %2300 = vmatmul.mubr.msk.f32.vlgmr.msra.gmra.mxu0 %vm805_vm9, %v3570_v31  ;;  %v597_v59 = vpop.permute.xlu1 %596 }
 0x255   : > { %1110 = vmatpush1.msra.mxu0 %v3136_v47  ;;  %v706_v62 = vsel %vm678_vm8, %v595_v15, %v597_v59  ;;  %v1568_v45 = vpop.permute.xlu0 %1567  ;;  %1159 = vmatprep.mubr.f32.mxu0 %v4400_v12  ;;  %v4413_v15 = vld [vmem:[#allocation12_spill] sm:$0xff]  ;;  %v4422_v59 = vld [vmem:[#allocation51_spill] sm:$0xff] }
 0x256   : > { %1111 = vmatprep.subr.mxu0 %v3133_v33  ;;  %2354 = vmatpush3.msra.mxu1 %v706_v62  ;;  %v699_v33 = vsel %vm678_vm8, %v3390_v29, %v3406_v39  ;;  %v4401_v29 = vld [vmem:[#allocation38_spill] sm:$0xff]  ;;  %v3940_v39 = vld [vmem:[%s2804_s27 + $0x20] sm:$0xff] }
 0x257   : > { %1112 = vmatpush1.msra.mxu0 %v3155_v27  ;;  %1580 = vrot.lane.b32.xlu0 %v2502_v32, %s2663_s8  ;;  %v692_v27 = vsel %vm678_vm8, %v3340_v21, %v3346_v9  ;;  %v4403_v21 = vld [vmem:[#allocation47_spill] sm:$0xff] }
 0x258   : > { %1113 = vmatprep.subr.mxu0 %v3166_v19  ;;  %1604 = vrot.lane.b32.xlu1 %v1414_v4, %s2663_s8  ;;  %v1570_v47 = vpop.permute.xlu1 %1569  ;;  %v3932_v19 = vld [vmem:[%s2804_s27 + $0x28] sm:$0xff]  ;;  %v685_v9 = vsel %vm678_vm8, %v3293_v46, %v4403_v21  ;;  %v1576_v46 = vsel %vm516_vm3, %v3641_v16, %v1568_v45 }
 0x259   : > { %2355 = vmatprep.subr.mxu1 %v4400_v12  ;;  %1114 = vmatpush1.msra.mxu0 %v3187_v11  ;;  %v1545_v63 = vpop.permute.xlu0 %1544  ;;  %v1577_v49 = vsel %vm516_vm3, %v1568_v45, %v1570_v47  ;;  %v4423_v4 = vld [vmem:[#allocation45_spill] sm:$0xff] }
 0x25a   : > { %2356 = vmatpush3.msra.mxu1 %v699_v33  ;;  %1115 = vmatprep.subr.mxu0 %v3191_v17  ;;  %v1553_v36 = vsel %vm485_vm4, %v3670_v0, %v1545_v63  ;;  %v4419_v0 = vld [vmem:[#allocation43_spill] sm:$0xff] }
 0x25b   : > { %2357 = vmatprep.subr.mxu1 %v4400_v12  ;;  %1116 = vmatpush1.msra.mxu0 %v3213_v8  ;;  %v4402_v8 = vld [vmem:[#allocation42_spill] sm:$0xff]  ;;  %v4425_v33 = vld [vmem:[#allocation27_spill] sm:$0xff] }
 0x25c   : > { %1588 = vrot.lane.b32.xlu0 %v3932_v19, %s2663_s8  ;;  %2358 = vmatpush3.msra.mxu1 %v692_v27  ;;  %v3936_v11 = vpop.permute.xlu1 %1546  ;;  %v4428_v27 = vld [vmem:[#allocation37_spill] sm:$0xff] }
 0x25d   : > { %1117 = vmatprep.subr.mxu0 %v4401_v29  ;;  %1586 = vrot.lane.b32.xlu1 %v3940_v39, %s2663_s8  ;;  %v1522_v17 = vpop.permute.xlu0 %1521  ;;  %v1554_v34 = vsel %vm485_vm4, %v1545_v63, %v3936_v11  ;;  %v4426_v63 = vld [vmem:[#allocation52_spill] sm:$0xff] }
 0x25e   : > { %2359 = vmatprep.subr.mxu1 %v4400_v12  ;;  %1118 = vmatpush1.msra.mxu0 %v4402_v8  ;;  %v1530_v22 = vsel %vm454_vm5, %v3701_v44, %v1522_v17  ;;  %v4427_v44 = vld [vmem:[#allocation21_spill] sm:$0xff]  ;;  %v4429_v8 = vld [vmem:[#allocation20_spill] sm:$0xff] }
 0x25f   : > { %2360 = vmatpush3.msra.mxu1 %v685_v9  ;;  %1119 = vmatprep.subr.mxu0 %v4404_v14  ;;  %v4430_v9 = vld [vmem:[#allocation14_spill] sm:$0xff]  ;;  %v4431_v14 = vld [vmem:[#allocation41_spill] sm:$0xff] }
 0x260   : > { %1120 = vmatpush1.msra.mxu0 %v4405_v38  ;;  %1180 = vmatprep.subr.mxu1 %v4406_v61  ;;  %v3952_v35 = vpop.permute.xlu1 %1523  ;;  %v4432_v38 = vld [vmem:[#allocation13_spill] sm:$0xff] }
 0x261   : > { %2362 = vmatmul.mubr.msk.f32.vlgmr.msra.gmra.mxu1 %vm805_vm9, %v3570_v31  ;;  %1121 = vmatprep.subr.mxu0 %v4407_v25  ;;  %v1499_v51 = vpop.permute.xlu0 %1498  ;;  %v4435_v25 = vld [vmem:[#allocation23_spill] sm:$0xff] }
 0x262   : > { %1181 = vmatpush1.msra.mxu1 %v4408_v42  ;;  %1720 = vrot.lane.b32.xlu0 %v1577_v49, %s2663_s8  ;;  %v1507_v49 = vsel %vm423_vm6, %v3748_v60, %v1499_v51  ;;  %v4439_v42 = vld [vmem:[#allocation50_spill] sm:$0xff] }
 0x263   : > { %1718 = vrot.lane.b32.xlu1 %v1576_v46, %s2663_s8  ;;  %1122 = vmatpush1.msra.mxu0 %v4409_v7  ;;  %v4438_v46 = vld [vmem:[#allocation16_spill] sm:$0xff] }
 0x264   : > { %1182 = vmatprep.subr.mxu1 %v4410_v28  ;;  %1123 = vmatprep.subr.mxu0 %v4411_v24  ;;  %v3966_v31 = vpop.permute.xlu1 %1500  ;;  %v4440_v24 = vld [vmem:[#allocation15_spill] sm:$0xff] }
 0x265   : > { %1183 = vmatpush1.msra.mxu1 %v4412_v6  ;;  %1124 = vmatpush1.msra.mxu0 %v4413_v15  ;;  %v3970_v16 = vpop.permute.xlu0 %1475  ;;  %v4441_v6 = vld [vmem:[#allocation53_spill] sm:$0xff] }
 0x266   : > { %1184 = vmatprep.subr.mxu1 %v4414_v13  ;;  %1125 = vmatprep.subr.mxu0 %v2502_v32  ;;  %v4424_v32 = vld [vmem:[#allocation34_spill] sm:$0xff] }
 0x267   : > { %1185 = vmatpush1.msra.mxu1 %v4415_v50  ;;  %1704 = vrot.lane.b32.xlu0 %v1554_v34, %s2663_s8 }
 0x268   : > { %1702 = vrot.lane.b32.xlu1 %v1553_v36, %s2663_s8  ;;  %1126 = vmatpush1.msra.mxu0 %v2505_v23  ;;  %v3983_v2 = vpop.permute.xlu1 %1477  ;;  %v4443_v23 = vld [vmem:[#allocation17_spill] sm:$0xff] }
 0x269   : > { %1186 = vmatprep.subr.mxu1 %v4416_v3  ;;  %1251 = vmatprep.subr.mxu0 %v4417_v41  ;;  %v3987_v26 = vpop.permute.xlu0 %1452  ;;  %v2506_v41 = vld [vmem:[%s2804_s27 + $0x30] sm:$0xff] }
 0x26a   : > { %1187 = vmatpush1.msra.mxu1 %v4418_v18  ;;  %2302 = vmatmul.mubr.msk.f32.vlgmr.msra.gmra.mxu0 %vm805_vm9, %v3979_v1 }
 0x26b   : > { %1188 = vmatprep.subr.mxu1 %v4419_v0  ;;  %1252 = vmatpush1.msra.mxu0 %v4420_v56 }
 0x26c   : > { %1189 = vmatpush1.msra.mxu1 %v4421_v37  ;;  %1253 = vmatprep.subr.mxu0 %v4422_v59  ;;  %v3998_v62 = vpop.permute.xlu1 %1454 }
 0x26d   : > { %1722 = vrot.lane.b32.xlu1 %v1570_v47, %s2663_s8  ;;  %1686 = vrot.lane.b32.xlu0 %v1530_v22, %s2663_s8  ;;  %v4002_v45 = vpop.permute.xlu0 %1429  ;;  %v1531_v47 = vsel %vm454_vm5, %v1522_v17, %v3952_v35 }
 0x26e   : > { %1190 = vmatprep.subr.mxu1 %v4423_v4  ;;  %1254 = vmatpush1.msra.mxu0 %v4424_v32  ;;  %v2664_v32 = vmov 0  }
 0x26f   : > { %1191 = vmatpush1.msra.mxu1 %v4425_v33  ;;  %1255 = vmatprep.subr.mxu0 %v4426_v63 }
 0x270   : > { %1192 = vmatprep.subr.mxu1 %v4427_v44  ;;  %1256 = vmatpush1.msra.mxu0 %v4428_v27  ;;  %v4010_v29 = vpop.permute.xlu1 %1431 }
 0x271   : > { %1193 = vmatpush1.msra.mxu1 %v4429_v8  ;;  %1257 = vmatprep.subr.mxu0 %v3476_v43  ;;  %v4016_v21 = vpop.permute.xlu0 %1406  ;;  %v4433_v43 = vld [vmem:[#allocation44_spill] sm:$0xff] }
 0x272   : > { %1688 = vrot.lane.b32.xlu1 %v1531_v47, %s2663_s8  ;;  %1706 = vrot.lane.b32.xlu0 %v3936_v11, %s2663_s8  ;;  %v1508_v11 = vsel %vm423_vm6, %v1499_v51, %v3966_v31  ;;  %v1484_v51 = vsel %vm392_vm7, %v3789_v5, %v3970_v16  ;;  %v1485_v5 = vsel %vm392_vm7, %v3970_v16, %v3983_v2  ;;  %v2507_v47 = vld [vmem:[%s2804_s27 + $0x38] sm:$0xff]  ;;  %s2181_s27 = sshll.u32 %s262_s14, 4  ;;  %s2182_s27 = int_to_ptr.vmem [resolvable:$true] %s2181_s27 }
 0x273   : > { %1194 = vmatprep.subr.mxu1 %v4430_v9  ;;  %1258 = vmatpush1.msra.mxu0 %v4431_v14  ;;  %v1415_v37 = vsel %vm299_vm0, %v3894_v58, %v4016_v21  ;;  %s2562_s18 = scalar_lea.vmem %s2182_s27, 896  ;;  %p2569_p2 = scmp.lt.s32.totalorder %s2182_s27, %s2567_s5 }
 0x274   : > { %1195 = vmatpush1.msra.mxu1 %v4432_v38  ;;  %1259 = vmatprep.subr.mxu0 %v3508_v30  ;;  %v4025_v17 = vpop.permute.xlu1 %1408  ;;  %v4434_v30 = vld [vmem:[#allocation46_spill] sm:$0xff]  ;;  %p2563_p1 = scmp.ne.s32.totalorder %s2182_s27, %s2562_s18  ;;  %p2570_p5 = scmp.lt.s32.totalorder %s2568_s23, %s2562_s18 }
 0x275   : > { %1196 = vmatprep.subr.mxu1 %v3901_v57  ;;  %1260 = vmatpush1.msra.mxu0 %v4433_v43  ;;  %v1711_v61 = vpop.permute.xlu0 %1710 }
 0x276   : > { %1197 = vmatpush1.msra.mxu1 %v3883_v54  ;;  %1261 = vmatprep.subr.mxu0 %v3593_v10  ;;  %v4436_v54 = vld [vmem:[#allocation48_spill] sm:$0xff]  ;;  %v4437_v10 = vld [vmem:[#allocation22_spill] sm:$0xff]  ;;  %p2564_p8 = pnand %p2563_p1, %p2774_p13  ;;  %p2571_p7 = por %p2570_p5, %p2569_p2 }
 0x277   : > { %1672 = vrot.lane.b32.xlu0 %v1508_v11, %s2663_s8  ;;  %1670 = vrot.lane.b32.xlu1 %v1507_v49, %s2663_s8 }
 0x278   : > { %1230 = vmatprep.mubr.f32.mxu1 %v4400_v12  ;;  %1262 = vmatpush1.msra.mxu0 %v4434_v30  ;;  %v1713_v57 = vpop.permute.xlu1 %1712  ;;  %p2565_p11 = pneg %p2564_p8 }
 0x279   : > { %2364 = vmatprep.subr.mxu1 %v4400_v12  ;;  %2303 = vmatmul.mubr.msk.f32.vlgmr.msra.gmra.mxu1 %vm805_vm9, %v3979_v1  ;;  %v1709_v60 = vpop.permute.xlu0 %1708  ;;  %v1782_v15 = vsel %vm1724_vm11, %v1711_v61, %v1713_v57 }
 0x27a   : > { %1263 = vmatprep.subr.mxu0 %v4435_v25  ;;  %2365 = vmatpush3.msra.mxu1 %v4436_v54  ;;  %p2572_p6 = pnand %p2571_p7, %p2565_p11 }
 0x27b   : > { %1264 = vmatpush1.msra.mxu0 %v4437_v10  ;;  %2366 = vmatprep.subr.mxu1 %v4400_v12 }
 0x27c   : > { %1265 = vmatprep.subr.mxu0 %v4438_v46  ;;  %2367 = vmatpush3.msra.mxu1 %v4439_v42  ;;  %v1695_v7 = vpop.permute.xlu1 %1694 }
 0x27d   : > { %1690 = vrot.lane.b32.xlu1 %v3952_v35, %s2663_s8  ;;  %1654 = vrot.lane.b32.xlu0 %v1484_v51, %s2663_s8  ;;  %v4054_v28 = vpop.permute.xlu0 %1696 }
 0x27e   : > { %1266 = vmatpush1.msra.mxu0 %v4440_v24  ;;  %2368 = vmatprep.subr.mxu1 %v4400_v12 }
 0x27f   : > { %2369 = vmatpush3.msra.mxu1 %v4441_v6  ;;  %1267 = vmatprep.subr.mxu0 %v3932_v19  ;;  %v1461_v19 = vsel %vm361_vm2, %v3829_v20, %v3987_v26  ;;  %v4442_v20 = vld [vmem:[#allocation24_spill] sm:$0xff] }
 0x280   : > { %2370 = vmatprep.subr.mxu1 %v4400_v12  ;;  %1268 = vmatpush1.msra.mxu0 %v3940_v39  ;;  %v1715_v35 = vpop.permute.xlu1 %1714 }
 0x281   : > { %2371 = vmatpush3.msra.mxu1 %v3471_v55  ;;  %1656 = vrot.lane.b32.xlu1 %v1485_v5, %s2663_s8  ;;  %v4068_v34 = vpop.permute.xlu0 %1716  ;;  %v1781_v55 = vsel %vm1724_vm11, %v1709_v60, %v1711_v61 }
 0x282   : > { %1674 = vrot.lane.b32.xlu0 %v3966_v31, %s2663_s8  ;;  %2372 = vmatprep.subr.mxu1 %v4400_v12  ;;  %v1462_v31 = vsel %vm361_vm2, %v3987_v26, %v3998_v62  ;;  %v1784_v3 = vsel %vm1724_vm11, %v1715_v35, %v4068_v34 }
 0x283   : > { %2373 = vmatpush3.msra.mxu1 %v3520_v40  ;;  %1301 = vmatprep.mubr.f32.mxu0 %v4400_v12  ;;  %v1775_v40 = vsel %vm1724_vm11, %v1695_v7, %v4054_v28 }
 0x284   : > { %2374 = vmatprep.subr.mxu1 %v4400_v12  ;;  %1868 = vmatprep.subr.mxu0 %v1782_v15  ;;  %v1693_v39 = vpop.permute.xlu1 %1692 }
 0x285   : > { %2375 = vmatpush3.msra.mxu1 %v3604_v53  ;;  %1638 = vrot.lane.b32.xlu1 %v1461_v19, %s2663_s8  ;;  %v1679_v16 = vpop.permute.xlu0 %1678  ;;  %v1438_v53 = vsel %vm330_vm1, %v3856_v48, %v4002_v45  ;;  %v1774_v36 = vsel %vm1724_vm11, %v1693_v39, %v1695_v7  ;;  %v1439_v48 = vsel %vm330_vm1, %v4002_v45, %v4010_v29 }
 0x286   : > { %1640 = vrot.lane.b32.xlu0 %v1462_v31, %s2663_s8  ;;  %2304 = vmatmul.mubr.msk.f32.vlgmr.msra.gmra.mxu0 %vm805_vm9, %v3979_v1 }
 0x287   : > { %2376 = vmatprep.subr.mxu1 %v4400_v12  ;;  %1869 = vmatpush1.msra.mxu0 %v1781_v55 }
 0x288   : > { %2377 = vmatpush3.msra.mxu1 %v4442_v20  ;;  %1870 = vmatprep.subr.mxu0 %v1775_v40  ;;  %v1681_v13 = vpop.permute.xlu1 %1680 }
 0x289   : > { %2378 = vmatprep.subr.mxu1 %v4400_v12  ;;  %1658 = vrot.lane.b32.xlu1 %v3983_v2, %s2663_s8  ;;  %v1699_v50 = vpop.permute.xlu0 %1698  ;;  %v1783_v2 = vsel %vm1724_vm11, %v1713_v57, %v1715_v35  ;;  %v1768_v26 = vsel %vm1724_vm11, %v1679_v16, %v1681_v13 }
 0x28a   : > { %2379 = vmatpush3.msra.mxu1 %v4443_v23  ;;  %1622 = vrot.lane.b32.xlu0 %v1438_v53, %s2663_s8  ;;  %v1776_v59 = vsel %vm1724_vm11, %v4054_v28, %v1699_v50 }
 0x28b   : > { %2380 = vmatprep.subr.mxu1 %v4400_v12  ;;  %2382 = vmatprep.mubr.msk.f32.mxu1 %vm2662_vm10, %v4400_v12 }
 0x28c   : > { %2381 = vmatpush3.msra.mxu1 %v2506_v41  ;;  %1871 = vmatpush1.msra.mxu0 %v1774_v36  ;;  %v4112_v18 = vpop.permute.xlu1 %1700 }
 0x28d   : > { %1624 = vrot.lane.b32.xlu1 %v1439_v48, %s2663_s8  ;;  %1939 = vmatprep.subr.mxu1 %v1784_v3  ;;  %v1677_v0 = vpop.permute.xlu0 %1676  ;;  %v1777_v56 = vsel %vm1724_vm11, %v1699_v50, %v4112_v18 }
 0x28e   : > { %1642 = vrot.lane.b32.xlu0 %v3998_v62, %s2663_s8  ;;  %2383 = vmatmul.mubr.msk.f32.vlgmr.msra.gmra.mxu1 %vm805_vm9, %v3979_v1  ;;  %v1767_v22 = vsel %vm1724_vm11, %v1677_v0, %v1679_v16  ;;  %v1416_v62 = vsel %vm299_vm0, %v4016_v21, %v4025_v17 }
 0x28f   : > { %1940 = vmatpush1.msra.mxu1 %v1783_v2  ;;  %1872 = vmatprep.subr.mxu0 %v1768_v26 }
 0x290   : > { %1873 = vmatpush1.msra.mxu0 %v1767_v22  ;;  %1941 = vmatprep.subr.mxu1 %v1777_v56  ;;  %v1663_v45 = vpop.permute.xlu1 %1662 }
 0x291   : > { %1606 = vrot.lane.b32.xlu1 %v1415_v37, %s2663_s8  ;;  %1942 = vmatpush1.msra.mxu1 %v1776_v59  ;;  %v1665_v1 = vpop.permute.xlu0 %1664 }
 0x292   : > { %1608 = vrot.lane.b32.xlu0 %v1416_v62, %s2663_s8  ;;  %v1761_v4 = vsel %vm1724_vm11, %v1663_v45, %v1665_v1  ;;  %1918 = vmatprep.mubr.f32.mxu0 %v4400_v12 }
 0x293   : > { %1874 = vmatprep.subr.mxu0 %v1761_v4  ;;  %1989 = vmatprep.mubr.f32.mxu1 %v4400_v12 }
 0x294   : > { %v1683_v58 = vpop.permute.xlu1 %1682  ;;  %2499 = vset.pattern.permute.xlu0 %v2664_v32 }
 0x295   : > { %1626 = vrot.lane.b32.xlu1 %v4010_v29, %s2663_s8  ;;  %v1769_v33 = vsel %vm1724_vm11, %v1681_v13, %v1683_v58  ;;  %v4138_v63 = vpop.permute.xlu0 %1684  ;;  %v2144_v29 = vld [vmem:[%s4300_s2] sm:$0xff] }
 0x296   : > { %1590 = vrot.lane.b32.xlu0 %v2506_v41, %s2663_s8  ;;  %v1770_v44 = vsel %vm1724_vm11, %v1683_v58, %v4138_v63  ;;  %v4182_v41 = vld [vmem:[#allocation5 + $0x10] sm:$0xff] }
 0x297   : > { %1943 = vmatprep.subr.mxu1 %v1770_v44 }
 0x298   : > { %1944 = vmatpush1.msra.mxu1 %v1769_v33  ;;  %v1661_v27 = vpop.permute.xlu1 %1660 }
 0x299   : > { %1592 = vrot.lane.b32.xlu1 %v2507_v47, %s2663_s8  ;;  %v1760_v8 = vsel %vm1724_vm11, %v1661_v27, %v1663_v45  ;;  %v1647_v21 = vpop.permute.xlu0 %1646 }
 0x29a   : > { %1610 = vrot.lane.b32.xlu0 %v4025_v17, %s2663_s8  ;;  %1875 = vmatpush1.msra.mxu0 %v1760_v8 }
 0x29c   : > { %v1649_v9 = vpop.permute.xlu1 %1648 }
 0x29d   : > { %1594 = vrot.lane.b32.xlu1 %v3650_v52, %s2663_s8  ;;  %v1667_v14 = vpop.permute.xlu0 %1666  ;;  %v1754_v38 = vsel %vm1724_vm11, %v1647_v21, %v1649_v9 }
 0x29e   : > { %1876 = vmatprep.subr.mxu0 %v1754_v38  ;;  %2147 = vperm.xlu0 %2499, %v2144_v29   ;;  %v1762_v49 = vsel %vm1724_vm11, %v1665_v1, %v1667_v14 }
 0x2a0   : > { %v4154_v43 = vpop.permute.xlu1 %1668 }
 0x2a1   : > { %v1645_v61 = vpop.permute.xlu0 %1644  ;;  %v1763_v17 = vsel %vm1724_vm11, %v1667_v14, %v4154_v43 }
 0x2a2   : > { %v1753_v11 = vsel %vm1724_vm11, %v1645_v61, %v1647_v21  ;;  %1945 = vmatprep.subr.mxu1 %v1763_v17 }
 0x2a3   : > { %1877 = vmatpush1.msra.mxu0 %v1753_v11  ;;  %1946 = vmatpush1.msra.mxu1 %v1762_v49 }
 0x2a4   : > { %v1631_v30 = vpop.permute.xlu1 %1630 }
 0x2a5   : > { %v1633_v52 = vpop.permute.xlu0 %1632 }
 0x2a6   : > { %v1747_v57 = vsel %vm1724_vm11, %v1631_v30, %v1633_v52 }
 0x2a7   : > { %1878 = vmatprep.subr.mxu0 %v1747_v57 }
 0x2a8   : > { %v1651_v60 = vpop.permute.xlu1 %1650 }
 0x2a9   : > { %v1755_v25 = vsel %vm1724_vm11, %v1649_v9, %v1651_v60  ;;  %v4162_v54 = vpop.permute.xlu0 %1652 }
 0x2aa   : > { %v1756_v10 = vsel %vm1724_vm11, %v1651_v60, %v4162_v54 }
 0x2ab   : > { %1947 = vmatprep.subr.mxu1 %v1756_v10 }
 0x2ac   : > { %1948 = vmatpush1.msra.mxu1 %v1755_v25  ;;  %v1629_v51 = vpop.permute.xlu1 %1628 }
 0x2ad   : > { %v1746_v46 = vsel %vm1724_vm11, %v1629_v51, %v1631_v30  ;;  %v1615_v42 = vpop.permute.xlu0 %1614 }
 0x2ae   : > { %1879 = vmatpush1.msra.mxu0 %v1746_v46 }
 0x2b0   : > { %v1617_v7 = vpop.permute.xlu1 %1616 }
 0x2b1   : > { %v1635_v28 = vpop.permute.xlu0 %1634  ;;  %v1740_v24 = vsel %vm1724_vm11, %v1615_v42, %v1617_v7 }
 0x2b2   : > { %1880 = vmatprep.subr.mxu0 %v1740_v24  ;;  %v1748_v15 = vsel %vm1724_vm11, %v1633_v52, %v1635_v28 }
 0x2b4   : > { %v4168_v6 = vpop.permute.xlu1 %1636 }
 0x2b5   : > { %v1613_v5 = vpop.permute.xlu0 %1612  ;;  %v1749_v35 = vsel %vm1724_vm11, %v1635_v28, %v4168_v6 }
 0x2b6   : > { %v1739_v19 = vsel %vm1724_vm11, %v1613_v5, %v1615_v42  ;;  %1949 = vmatprep.subr.mxu1 %v1749_v35 }
 0x2b7   : > { %1881 = vmatpush1.msra.mxu0 %v1739_v19  ;;  %1950 = vmatpush1.msra.mxu1 %v1748_v15 }
 0x2b8   : > { %v1599_v55 = vpop.permute.xlu1 %1598 }
 0x2b9   : > { %v1601_v39 = vpop.permute.xlu0 %1600 }
 0x2ba   : > { %v1733_v31 = vsel %vm1724_vm11, %v1599_v55, %v1601_v39 }
 0x2bb   : > { %1882 = vmatprep.subr.mxu0 %v1733_v31 }
 0x2bc   : > { %v1619_v40 = vpop.permute.xlu1 %1618 }
 0x2bd   : > { %v1741_v16 = vsel %vm1724_vm11, %v1617_v7, %v1619_v40  ;;  %v4176_v20 = vpop.permute.xlu0 %1620 }
 0x2be   : > { %v1742_v13 = vsel %vm1724_vm11, %v1619_v40, %v4176_v20 }
 0x2bf   : > { %1951 = vmatprep.subr.mxu1 %v1742_v13 }
 0x2c0   : > { %1952 = vmatpush1.msra.mxu1 %v1741_v16  ;;  %v1597_v53 = vpop.permute.xlu1 %1596 }
 0x2c1   : > { %v1732_v36 = vsel %vm1724_vm11, %v1597_v53, %v1599_v55  ;;  %v1583_v50 = vpop.permute.xlu0 %1582 }
 0x2c2   : > { %1883 = vmatpush1.msra.mxu0 %v1732_v36 }
 0x2c4   : > { %v1585_v23 = vpop.permute.xlu1 %1584 }
 0x2c5   : > { %v1603_v3 = vpop.permute.xlu0 %1602  ;;  %v1726_v48 = vsel %vm1724_vm11, %v1583_v50, %v1585_v23 }
 0x2c6   : > { %1884 = vmatprep.subr.mxu0 %v1726_v48  ;;  %v1734_v22 = vsel %vm1724_vm11, %v1601_v39, %v1603_v3 }
 0x2c9   : > { %v1581_v2 = vpop.permute.xlu0 %1580 }
 0x2ca   : > { %v4184_v26 = vpop.permute.xlu1 %1604  ;;  %v1725_v0 = vsel %vm1724_vm11, %v1581_v2, %v1583_v50 }
 0x2cb   : > { %1885 = vmatpush1.msra.mxu0 %v1725_v0  ;;  %v1735_v56 = vsel %vm1724_vm11, %v1603_v3, %v4184_v26 }
 0x2cc   : > { %1953 = vmatprep.subr.mxu1 %v1735_v56  ;;  %2306 = vmatmul.mubr.msk.f32.vlgmr.msra.gmra.mxu0 %vm805_vm9, %v4182_v41 }
 0x2cd   : > { %1954 = vmatpush1.msra.mxu1 %v1734_v22  ;;  %2060 = vmatprep.mubr.f32.mxu0 %v4400_v12 }
 0x2ce   : > { %v4193_v37 = vpop.permute.xlu0 %1588 }
 0x2cf   : > { %v1587_v59 = vpop.permute.xlu1 %1586 }
 0x2d0   : > { %v1727_v45 = vsel %vm1724_vm11, %v1585_v23, %v1587_v59  ;;  %v1728_v62 = vsel %vm1724_vm11, %v1587_v59, %v4193_v37 }
 0x2d1   : > { %1955 = vmatprep.subr.mxu1 %v1728_v62 }
 0x2d2   : > { %1956 = vmatpush1.msra.mxu1 %v1727_v45 }
 0x2d3   : > { %2307 = vmatmul.mubr.msk.f32.vlgmr.msra.gmra.mxu1 %vm805_vm9, %v4182_v41  ;;  %2385 = vmatprep.subr.mxu1 %v4400_v12 }
 0x2d4   : > { %v1721_v1 = vpop.permute.xlu0 %1720  ;;  %2403 = vmatprep.mubr.msk.f32.mxu1 %vm2662_vm10, %v4400_v12 }
 0x2d5   : > { %v1719_v4 = vpop.permute.xlu1 %1718 }
 0x2d6   : > { %v1785_v58 = vsel %vm1724_vm11, %v4068_v34, %v1719_v4  ;;  %v1786_v32 = vsel %vm1724_vm11, %v1719_v4, %v1721_v1 }
 0x2d7   : > { %2010 = vmatprep.subr.mxu0 %v1786_v32 }
 0x2d8   : > { %2011 = vmatpush1.msra.mxu0 %v1785_v58 }
 0x2d9   : > { %v1705_v33 = vpop.permute.xlu0 %1704 }
 0x2da   : > { %v1703_v44 = vpop.permute.xlu1 %1702 }
 0x2db   : > { %v1778_v27 = vsel %vm1724_vm11, %v4112_v18, %v1703_v44  ;;  %v1779_v47 = vsel %vm1724_vm11, %v1703_v44, %v1705_v33 }
 0x2dc   : > { %2012 = vmatprep.subr.mxu0 %v1779_v47 }
 0x2dd   : > { %2013 = vmatpush1.msra.mxu0 %v1778_v27 }
 0x2df   : > { %v1723_v8 = vpop.permute.xlu1 %1722  ;;  %v1687_v21 = vpop.permute.xlu0 %1686 }
 0x2e0   : > { %v1787_v29 = vsel %vm1724_vm11, %v1721_v1, %v1723_v8  ;;  %v1771_v18 = vsel %vm1724_vm11, %v4138_v63, %v1687_v21 }
 0x2e1   : > { %2386 = vmatpush3.msra.mxu1 %v1787_v29 }
 0x2e2   : > { %2387 = vmatprep.subr.mxu1 %v4400_v12 }
 0x2e4   : > { %v1689_v34 = vpop.permute.xlu1 %1688  ;;  %v1707_v9 = vpop.permute.xlu0 %1706 }
 0x2e5   : > { %v1780_v14 = vsel %vm1724_vm11, %v1705_v33, %v1707_v9  ;;  %v1772_v38 = vsel %vm1724_vm11, %v1687_v21, %v1689_v34 }
 0x2e6   : > { %2014 = vmatprep.subr.mxu0 %v1772_v38  ;;  %2388 = vmatpush3.msra.mxu1 %v1780_v14 }
 0x2e7   : > { %2015 = vmatpush1.msra.mxu0 %v1771_v18  ;;  %2389 = vmatprep.subr.mxu1 %v4400_v12 }
 0x2e9   : > { %v1671_v61 = vpop.permute.xlu1 %1670  ;;  %v1673_v17 = vpop.permute.xlu0 %1672 }
 0x2ea   : > { %v1764_v49 = vsel %vm1724_vm11, %v4154_v43, %v1671_v61  ;;  %v1765_v11 = vsel %vm1724_vm11, %v1671_v61, %v1673_v17 }
 0x2eb   : > { %2016 = vmatprep.subr.mxu0 %v1765_v11 }
 0x2ec   : > { %2017 = vmatpush1.msra.mxu0 %v1764_v49 }
 0x2ef   : > { %v1691_v30 = vpop.permute.xlu1 %1690  ;;  %v1655_v52 = vpop.permute.xlu0 %1654 }
 0x2f0   : > { %v1773_v57 = vsel %vm1724_vm11, %v1689_v34, %v1691_v30  ;;  %v1757_v10 = vsel %vm1724_vm11, %v4162_v54, %v1655_v52 }
 0x2f1   : > { %2390 = vmatpush3.msra.mxu1 %v1773_v57 }
 0x2f2   : > { %2391 = vmatprep.subr.mxu1 %v4400_v12 }
 0x2f3   : > { %v1657_v63 = vpop.permute.xlu1 %1656 }
 0x2f4   : > { %v1675_v60 = vpop.permute.xlu0 %1674  ;;  %v1758_v25 = vsel %vm1724_vm11, %v1655_v52, %v1657_v63 }
 0x2f5   : > { %v1766_v43 = vsel %vm1724_vm11, %v1673_v17, %v1675_v60  ;;  %2018 = vmatprep.subr.mxu0 %v1758_v25 }
 0x2f6   : > { %2392 = vmatpush3.msra.mxu1 %v1766_v43  ;;  %2019 = vmatpush1.msra.mxu0 %v1757_v10 }
 0x2f7   : > { %v1639_v51 = vpop.permute.xlu1 %1638  ;;  %2393 = vmatprep.subr.mxu1 %v4400_v12 }
 0x2f8   : > { %v1750_v46 = vsel %vm1724_vm11, %v4168_v6, %v1639_v51  ;;  %v1641_v42 = vpop.permute.xlu0 %1640 }
 0x2f9   : > { %v1751_v7 = vsel %vm1724_vm11, %v1639_v51, %v1641_v42 }
 0x2fa   : > { %2020 = vmatprep.subr.mxu0 %v1751_v7 }
 0x2fb   : > { %2021 = vmatpush1.msra.mxu0 %v1750_v46  ;;  %v1659_v28 = vpop.permute.xlu1 %1658 }
 0x2fc   : > { %v1759_v24 = vsel %vm1724_vm11, %v1657_v63, %v1659_v28  ;;  %v1623_v54 = vpop.permute.xlu0 %1622 }
 0x2fd   : > { %2394 = vmatpush3.msra.mxu1 %v1759_v24  ;;  %v1743_v19 = vsel %vm1724_vm11, %v4176_v20, %v1623_v54 }
 0x2fe   : > { %2395 = vmatprep.subr.mxu1 %v4400_v12 }
 0x2ff   : > { %v1625_v5 = vpop.permute.xlu1 %1624 }
 0x300   : > { %v1643_v35 = vpop.permute.xlu0 %1642  ;;  %v1744_v15 = vsel %vm1724_vm11, %v1623_v54, %v1625_v5 }
 0x301   : > { %v1752_v6 = vsel %vm1724_vm11, %v1641_v42, %v1643_v35  ;;  %2022 = vmatprep.subr.mxu0 %v1744_v15 }
 0x302   : > { %2396 = vmatpush3.msra.mxu1 %v1752_v6  ;;  %2023 = vmatpush1.msra.mxu0 %v1743_v19 }
 0x303   : > { %v1607_v55 = vpop.permute.xlu1 %1606  ;;  %2397 = vmatprep.subr.mxu1 %v4400_v12 }
 0x304   : > { %v1736_v39 = vsel %vm1724_vm11, %v4184_v26, %v1607_v55  ;;  %v1609_v31 = vpop.permute.xlu0 %1608  ;;  %v946_v26 = vpop.f32.mrf.mxu1 }
 0x305   : > { %v1737_v40 = vsel %vm1724_vm11, %v1607_v55, %v1609_v31 }
 0x306   : > { %2024 = vmatprep.subr.mxu0 %v1737_v40  ;;  %v948_v0 = vpop.f32.mrf.mxu1 }
 0x307   : > { %2025 = vmatpush1.msra.mxu0 %v1736_v39  ;;  %v1627_v16 = vpop.permute.xlu1 %1626 }
 0x308   : > { %v1745_v13 = vsel %vm1724_vm11, %v1625_v5, %v1627_v16  ;;  %v1591_v20 = vpop.permute.xlu0 %1590 }
 0x309   : > { %2398 = vmatpush3.msra.mxu1 %v1745_v13  ;;  %v1729_v23 = vsel %vm1724_vm11, %v4193_v37, %v1591_v20  ;;  %v875_v37 = vpop.f32.mrf.mxu0 }
 0x30a   : > { %2399 = vmatprep.subr.mxu1 %v4400_v12 }
 0x30b   : > { %v1593_v53 = vpop.permute.xlu1 %1592  ;;  %v877_v59 = vpop.f32.mrf.mxu0 }
 0x30c   : > { %v1611_v36 = vpop.permute.xlu0 %1610  ;;  %v1730_v50 = vsel %vm1724_vm11, %v1591_v20, %v1593_v53 }
 0x30d   : > { %v1738_v3 = vsel %vm1724_vm11, %v1609_v31, %v1611_v36  ;;  %2026 = vmatprep.subr.mxu0 %v1730_v50 }
 0x30e   : > { %2400 = vmatpush3.msra.mxu1 %v1738_v3  ;;  %2027 = vmatpush1.msra.mxu0 %v1729_v23 }
 0x30f   : > { %v1595_v48 = vpop.permute.xlu1 %1594  ;;  %2308 = vmatmul.mubr.msk.f32.vlgmr.msra.gmra.mxu0 %vm805_vm9, %v4182_v41  ;;  %2401 = vmatprep.subr.mxu1 %v4400_v12 }
 0x310   : > { %v1731_v2 = vsel %vm1724_vm11, %v1593_v53, %v1595_v48 }
 0x311   : > { %2402 = vmatpush3.msra.mxu1 %v1731_v2 }
 0x312   : > { %2404 = vmatmul.mubr.msk.f32.vlgmr.msra.gmra.mxu1 %vm805_vm9, %v4182_v41 }
 0x314   : > { %v1017_v45 = vpop.f32.mrf.mxu0 }
 0x316   : > { %v1019_v4 = vpop.f32.mrf.mxu0 }
 0x319   : > { %v2148_v34 = vpop.permute.xlu0 %2147 }
 0x321   : > { %v1088_v56 = vpop.f32.mrf.mxu1 }
 0x323   : > { %v2363_v22 = vpop.f32.mrf.mxu1 }
 0x32a   : > { %v1161_v32 = vpop.f32.mrf.mxu0 }
 0x32b   : > { %v1162_v21 = vadd.f32 %v1161_v32, %v875_v37 }
 0x32c   : > { %v1163_v12 = vpop.f32.mrf.mxu0 }
 0x32d   : > { %v1164_v9 = vadd.f32 %v1163_v12, %v877_v59 }
 0x339   : > { %v1232_v62 = vpop.f32.mrf.mxu1 }
 0x33a   : > { %v1233_v49 = vadd.f32 %v1232_v62, %v946_v26 }
 0x33b   : > { %v1234_v1 = vpop.f32.mrf.mxu1 }
 0x33c   : > { %v1235_v58 = vadd.f32 %v1234_v1, %v948_v0 }
 0x346   : > { %v1303_v33 = vpop.f32.mrf.mxu0 }
 0x347   : > { %v1304_v44 = vadd.f32 %v1303_v33, %v1017_v45 }
 0x348   : > { %v1305_v41 = vpop.f32.mrf.mxu0 }
 0x349   : > { %v1306_v10 = vadd.f32 %v1305_v41, %v1019_v4 }
 0x34e   : > { %v1374_v27 = vpop.f32.mrf.mxu1 }
 0x34f   : > { %v1375_v47 = vadd.f32 %v1374_v27, %v1088_v56 }
 0x350   : > { %v2384_v8 = vpop.f32.mrf.mxu1 }
 0x38c   : > { %v1920_v29 = vpop.f32.mrf.mxu0 }
 0x38d   : > { %v2137_v14 = vadd.f32 %v1920_v29, %v1162_v21 }
 0x38e   : > { %v1922_v38 = vpop.f32.mrf.mxu0 }
 0x38f   : > { %v2138_v18 = vadd.f32 %v1922_v38, %v1164_v9  ;;  %v2150_v61 = vadd.f32 %v2148_v34, %v2137_v14 }
 0x391   : > { %v2151_v17 = vadd.f32 %v2148_v34, %v2138_v18  ;;  %2157 = vst [vmem:[%s262_s14] sm:$0xff] %v2150_v61 }
 0x393   : > { %2158 = vst [vmem:[%s262_s14 + $0x8] sm:$0xff] %v2151_v17  ;;  %v1991_v11 = vpop.f32.mrf.mxu1 }
 0x394   : > { %v2139_v30 = vadd.f32 %v1991_v11, %v1233_v49 }
 0x395   : > { %v1993_v52 = vpop.f32.mrf.mxu1 }
 0x396   : > { %v2152_v57 = vadd.f32 %v2148_v34, %v2139_v30  ;;  %v2140_v63 = vadd.f32 %v1993_v52, %v1235_v58 }
 0x398   : > { %2159 = vst [vmem:[%s262_s14 + $0x10] sm:$0xff] %v2152_v57  ;;  %v2153_v60 = vadd.f32 %v2148_v34, %v2140_v63 }
 0x39a   : > { %2160 = vst [vmem:[%s262_s14 + $0x18] sm:$0xff] %v2153_v60 }
 0x3cf   : > { %v2062_v25 = vpop.f32.mrf.mxu0 }
 0x3d0   : > { %v2141_v43 = vadd.f32 %v2062_v25, %v1304_v44 }
 0x3d1   : > { %v2064_v51 = vpop.f32.mrf.mxu0 }
 0x3d2   : > { %v2154_v46 = vadd.f32 %v2148_v34, %v2141_v43  ;;  %v2142_v42 = vadd.f32 %v2064_v51, %v1306_v10  ;;  %v2133_v7 = vpop.f32.mrf.mxu1 }
 0x3d3   : > { %v2143_v28 = vadd.f32 %v2133_v7, %v1375_v47 }
 0x3d4   : > { %2161 = vst [vmem:[%s262_s14 + $0x20] sm:$0xff] %v2154_v46  ;;  %v2155_v24 = vadd.f32 %v2148_v34, %v2142_v42  ;;  %v2405_v54 = vpop.f32.mrf.mxu1 }
 0x3d5   : > { %v2156_v5 = vadd.f32 %v2148_v34, %v2143_v28 }
 0x3d6   : > { %2162 = vst [vmem:[%s262_s14 + $0x28] sm:$0xff] %v2155_v24 }
 0x3d7   : > { %2163 = vst [vmem:[%s262_s14 + $0x30] sm:$0xff] %v2156_v5 }
 0x3d8   : > { %2575 = shalt.err (!%p2572_p6)
}
 0x3d9   : > { %s2576_s6 = scalar_lea.hbm %s4256_s26, 896  ;;  %s2580_s8 = scalar_lea.hbm %s4302_s4, 1792 }
 0x3da   : > { %p2577_p4 = scmp.ne.s32.totalorder %s4256_s26, %s2576_s6  ;;  %p2581_p0 = scmp.lt.s32.totalorder %s4256_s26, %s4302_s4 }
 0x3db   : > { %p2582_p3 = scmp.lt.s32.totalorder %s2580_s8, %s2576_s6 }
 0x3dc   : > { %p2578_p9 = pnand %p2577_p4, %p2774_p13 }
 0x3dd   : > { %p2583_p1 = por %p2582_p3, %p2581_p0 }
 0x3de   : > { %p2579_p12 = pneg %p2578_p9 }
 0x3e0   : > { %p2584_p8 = pnand %p2583_p1, %p2579_p12 }
 0x3e2   : > { %2587 = shalt.err (!%p2584_p8)
}
 0x3e3   : > { %2417 = dma.vmem_to_hbm [thread:$0]  (%p2774_p13), %s2182_s27, 896, %s4256_s26, %s2165_s28  }
 0x3e4 PF: > { %s2193_s12 = sand.u32 1, %s2626_s15   ;;  %p4444_p11 = scmp.ne.s32.totalorder %s4351_s25, 0 }
 0x3e5   : > { %s2194_s14 = scalar_lea.sflag [#allocation4], %s2193_s12 }
 0x3e6   : > { %p2428_p2 = pnand %p2294_p10, %p4444_p11 }
 0x3e8   : > { %p2429_p5 = pneg %p2428_p2 }
 0x3ea   : > { %2621 = dma.done.wait (%p2429_p5), %s2194_s14, 896  }
 0x3eb   : > { %2623 = vsyncadd (%p2429_p5), %s2194_s14, 4294966400  ;;  %s21_s20 = sadd.s32 1, %s2646_s20   ;;  %s4445_s15 = smov %s2630_s16 }
 0x3ec   : > { %p18_p7 = scmp.ge.s32.totalorder %s21_s20, 4   ;;  %s4446_s16 = smov %s2634_s17 }
 0x3ed   : > { %s4447_s17 = smov %s2783_s3  ;;  %s4448_s18 = smov %s2642_s19 }
 0x3ee   : > { %s4449_s19 = smov %s4451_s30  ;;  %20 = sbr.rel (!%p18_p7) target bundleno = 7 (0x7), region = 91 }
 0x3f3   :  { %2199 = vsyncpa [#allocation3], 1 }
 0x3f4   :  { %2201 = vsyncpa [#allocation3 + $0x1], 1 }
 0x3f5   :  { %2202 = vsyncpa [#allocation6], 1 }
 0x3f6   :  { %2203 = vsyncpa [#allocation4], 1 }
 0x3f7   :  { %2205 = vsyncpa [#allocation4 + $0x1], 1 }

</bundles_post_ra>
